<compile_context>
chip_gen: v7x
topology: tpu7x:2x2x1
jax: 0.10.0
libtpu: 0.0.40
codegen_flags: <defaults>
</compile_context>

<pallas_src>
import functools

import jax
import jax.numpy as jnp
from jax.experimental import pallas as pl
from jax.experimental.pallas import tpu as pltpu


# ---------------------------------------------------------------------------
# Fused kernels
# ---------------------------------------------------------------------------

def _bottleneck_s1_kernel(*refs, H, W, Cmid, identity_sc):
    """Fused bottleneck block, stride=1.  One batch image per grid step."""
    if identity_sc:
        (x_ref, w1_ref, b1_ref, w2_ref, b2_ref, w3_ref, b3_ref,
         o_ref, hp_ref) = refs
        wsc_ref = bsc_ref = None
    else:
        (x_ref, w1_ref, b1_ref, w2_ref, b2_ref, w3_ref, b3_ref,
         wsc_ref, bsc_ref, o_ref, hp_ref) = refs

    HW = H * W
    x2 = x_ref[0]                                  # (HW, Cin), no reshape needed

    # conv1 (1x1) + BN + ReLU -> zero-haloed VMEM scratch (halo handled in-kernel).
    h1 = jnp.maximum(
        jnp.dot(x2, w1_ref[...], preferred_element_type=jnp.float32) + b1_ref[...],
        0.0)
    # Zero the scratch every step (not only step 0): the batch grid axis may be
    # sharded across TensorCores, each with its own scratch instance.
    hp_ref[...] = jnp.zeros_like(hp_ref)
    hp_ref[1:H + 1, 1:W + 1, :] = h1.reshape(H, W, Cmid)

    # conv2 (3x3, pad=1, stride=1) + BN + ReLU: 9 tap matmuls; the hidden
    # activation never leaves VMEM.
    acc = None
    for dy in range(3):
        for dx in range(3):
            tap = hp_ref[dy:dy + H, dx:dx + W, :]          # ref-slice load
            part = jnp.dot(tap.reshape(HW, Cmid), w2_ref[dy * 3 + dx],
                           preferred_element_type=jnp.float32)
            acc = part if acc is None else acc + part
    h2 = jnp.maximum(acc + b2_ref[...], 0.0)

    # conv3 (1x1) + BN + shortcut + final ReLU (all fused).
    y = jnp.dot(h2, w3_ref[...], preferred_element_type=jnp.float32) + b3_ref[...]
    if identity_sc:
        sc = x2
    else:
        sc = jnp.dot(x2, wsc_ref[...], preferred_element_type=jnp.float32) + bsc_ref[...]
    o_ref[0] = jnp.maximum(y + sc, 0.0).astype(o_ref.dtype)


def _bottleneck_s2_kernel(*refs, Hout, Wout, Cmid, identity_sc):
    """Fused bottleneck block, stride=2 (stride in the 3x3 conv and shortcut).

    The input arrives as the 4 row/col-parity planes of x stacked on the row
    axis, so conv1 is one batched matmul and every stride-2 tap of the 3x3 conv
    is a plain (unstrided) slice of a VMEM-resident parity plane of the
    zero-haloed hidden activation (no 4x oversampled compute).
    """
    if identity_sc:
        (xq_ref, w1_ref, b1_ref, w2_ref, b2_ref, w3_ref, b3_ref,
         o_ref, hq_ref) = refs
        wsc_ref = bsc_ref = None
    else:
        (xq_ref, w1_ref, b1_ref, w2_ref, b2_ref, w3_ref, b3_ref,
         wsc_ref, bsc_ref, o_ref, hq_ref) = refs

    HWo = Hout * Wout
    xq2 = xq_ref[0]                                # (4*HWo, Cin)

    # conv1 (1x1, stride 1) + BN + ReLU over ALL 4 parity planes in ONE matmul.
    h_all = jnp.maximum(
        jnp.dot(xq2, w1_ref[...], preferred_element_type=jnp.float32) + b1_ref[...],
        0.0)

    # Padded plane p=(a,b) holds the hidden at zero-padded coords (2i+a, 2j+b);
    # conv2's zero padding is the zero-initialized border of the scratch.
    hq_ref[...] = jnp.zeros_like(hq_ref)
    for p in range(4):
        a, b = p // 2, p % 2
        ro, co = 1 - a, 1 - b
        hq_ref[p, ro:ro + Hout, co:co + Wout, :] = (
            h_all[p * HWo:(p + 1) * HWo].reshape(Hout, Wout, Cmid))

    # conv2 (3x3, pad=1, stride=2) + BN + ReLU: tap (dy,dx) reads parity plane
    # (dy&1, dx&1) at a plain static offset (dy//2, dx//2).
    acc = None
    for dy in range(3):
        for dx in range(3):
            p = 2 * (dy % 2) + (dx % 2)
            tap = hq_ref[p, dy // 2:dy // 2 + Hout, dx // 2:dx // 2 + Wout, :]
            part = jnp.dot(tap.reshape(HWo, Cmid), w2_ref[dy * 3 + dx],
                           preferred_element_type=jnp.float32)
            acc = part if acc is None else acc + part
    h2 = jnp.maximum(acc + b2_ref[...], 0.0)

    # conv3 (1x1) + BN + shortcut (1x1, stride 2) + final ReLU.
    y = jnp.dot(h2, w3_ref[...], preferred_element_type=jnp.float32) + b3_ref[...]
    x_even = xq2[3 * HWo:4 * HWo]                  # plane (1,1) = x[2*oy, 2*ox, :]
    if identity_sc:
        sc = x_even
    else:
        sc = jnp.dot(x_even, wsc_ref[...],
                     preferred_element_type=jnp.float32) + bsc_ref[...]
    o_ref[0] = jnp.maximum(y + sc, 0.0).astype(o_ref.dtype)


# ---------------------------------------------------------------------------
# BN folding / wrapper
# ---------------------------------------------------------------------------

def _fold_bn(gamma, beta, mean, var, eps=1e-5):
    scale = gamma / jnp.sqrt(var + eps)
    return scale, beta - mean * scale


def bottleneck_forward(x_nchw, params, *, stride):
    assert stride in (1, 2)
    N, Cin, H, W = x_nchw.shape
    Cmid = params["w1"].shape[1]
    Cout = params["w3"].shape[1]
    identity_sc = "wsc" not in params
    if identity_sc:
        assert Cin == Cout and stride == 1

    # Fold BN (eval-mode running stats) scales into conv weights; biases remain.
    s1, b1 = _fold_bn(*params["bn1"])
    s2, b2 = _fold_bn(*params["bn2"])
    s3, b3 = _fold_bn(*params["bn3"])
    w1 = params["w1"] * s1[None, :]
    w2 = (params["w2"] * s2[None, None, None, :]).reshape(9, Cmid, Cmid)
    w3 = params["w3"] * s3[None, :]
    b1 = b1.reshape(1, Cmid)
    b2 = b2.reshape(1, Cmid)
    b3 = b3.reshape(1, Cout)

    weight_inputs = [w1, b1, w2, b2, w3, b3]
    weight_specs = [
        pl.BlockSpec((Cin, Cmid), lambda n: (0, 0)),
        pl.BlockSpec((1, Cmid), lambda n: (0, 0)),
        pl.BlockSpec((9, Cmid, Cmid), lambda n: (0, 0, 0)),
        pl.BlockSpec((1, Cmid), lambda n: (0, 0)),
        pl.BlockSpec((Cmid, Cout), lambda n: (0, 0)),
        pl.BlockSpec((1, Cout), lambda n: (0, 0)),
    ]
    if not identity_sc:
        ssc, bsc = _fold_bn(*params["bnsc"])
        wsc = params["wsc"] * ssc[None, :]
        weight_inputs += [wsc, bsc.reshape(1, Cout)]
        weight_specs += [pl.BlockSpec((Cin, Cout), lambda n: (0, 0)),
                         pl.BlockSpec((1, Cout), lambda n: (0, 0))]

    x_nhwc = jnp.transpose(x_nchw, (0, 2, 3, 1))   # NCHW -> NHWC

    if stride == 1:
        HW = H * W
        x_flat = x_nhwc.reshape(N, HW, Cin)        # spatial onto sublanes (free reshape)
        kernel = functools.partial(_bottleneck_s1_kernel, H=H, W=W, Cmid=Cmid,
                                   identity_sc=identity_sc)
        out = pl.pallas_call(
            kernel,
            out_shape=jax.ShapeDtypeStruct((N, HW, Cout), x_nhwc.dtype),
            grid=(N,),
            in_specs=[pl.BlockSpec((1, HW, Cin), lambda n: (n, 0, 0))]
                     + weight_specs,
            out_specs=pl.BlockSpec((1, HW, Cout), lambda n: (n, 0, 0)),
            scratch_shapes=[pltpu.VMEM((H + 2, W + 2, Cmid), jnp.float32)],
            compiler_params=pltpu.CompilerParams(
                dimension_semantics=("parallel",)),
        )(x_flat, *weight_inputs)
        out_nhwc = out.reshape(N, H, W, Cout)
    else:
        assert H % 2 == 0 and W % 2 == 0
        Hout, Wout = H // 2, W // 2
        HWo = Hout * Wout
        # Row/col-parity re-stack of x: plane p=(a,b) = x[(1-a)::2, (1-b)::2],
        # stacked on the row axis so conv1 is a single matmul and every stride-2
        # conv tap is a plain slice in-kernel.
        planes = [x_nhwc[:, (1 - a)::2, (1 - b)::2, :]
                  for a in (0, 1) for b in (0, 1)]
        xq = jnp.stack(planes, axis=1).reshape(N, 4 * HWo, Cin)
        kernel = functools.partial(_bottleneck_s2_kernel, Hout=Hout, Wout=Wout,
                                   Cmid=Cmid, identity_sc=identity_sc)
        out = pl.pallas_call(
            kernel,
            out_shape=jax.ShapeDtypeStruct((N, HWo, Cout), x_nhwc.dtype),
            grid=(N,),
            in_specs=[pl.BlockSpec((1, 4 * HWo, Cin), lambda n: (n, 0, 0))]
                     + weight_specs,
            out_specs=pl.BlockSpec((1, HWo, Cout), lambda n: (n, 0, 0)),
            scratch_shapes=[pltpu.VMEM((4, Hout + 1, Wout + 1, Cmid),
                                       jnp.float32)],
            compiler_params=pltpu.CompilerParams(
                dimension_semantics=("parallel",)),
        )(xq, *weight_inputs)
        out_nhwc = out.reshape(N, Hout, Wout, Cout)

    return jnp.transpose(out_nhwc, (0, 3, 1, 2))    # NHWC -> NCHW


# ---------------------------------------------------------------------------
# Parameters / pure-JAX reference
# ---------------------------------------------------------------------------

def init_params(key, in_channels, out_channels, bottleneck_channels):
    ks = iter(jax.random.split(key, 24))

    def bn(c):
        return (1.0 + 0.1 * jax.random.normal(next(ks), (c,), jnp.float32),    # gamma
                0.1 * jax.random.normal(next(ks), (c,), jnp.float32),          # beta
                0.1 * jax.random.normal(next(ks), (c,), jnp.float32),          # running_mean
                0.5 + jnp.abs(jax.random.normal(next(ks), (c,), jnp.float32))) # running_var

    p = {}
    p["w1"] = 0.1 * jax.random.normal(next(ks), (in_channels, bottleneck_channels),
                                      jnp.float32)
    p["bn1"] = bn(bottleneck_channels)
    p["w2"] = 0.1 * jax.random.normal(
        next(ks), (3, 3, bottleneck_channels, bottleneck_channels), jnp.float32)
    p["bn2"] = bn(bottleneck_channels)
    p["w3"] = 0.1 * jax.random.normal(next(ks), (bottleneck_channels, out_channels),
                                      jnp.float32)
    p["bn3"] = bn(out_channels)
    if in_channels != out_channels:
        p["wsc"] = 0.1 * jax.random.normal(next(ks), (in_channels, out_channels),
                                           jnp.float32)
        p["bnsc"] = bn(out_channels)
    return p


def reference_forward(x_nchw, params, *, stride):
    # Pure-JAX reference (lax convolutions) for correctness checking.
    x = jnp.transpose(x_nchw, (0, 2, 3, 1))
    Cin = x.shape[-1]
    Cmid = params["w1"].shape[1]
    Cout = params["w3"].shape[1]
    dn = ("NHWC", "HWIO", "NHWC")

    s1, b1 = _fold_bn(*params["bn1"])
    h = jax.lax.conv_general_dilated(x, params["w1"].reshape(1, 1, Cin, Cmid),
                                     (1, 1), "VALID", dimension_numbers=dn)
    h = jnp.maximum(h * s1 + b1, 0.0)

    s2, b2 = _fold_bn(*params["bn2"])
    h = jax.lax.conv_general_dilated(h, params["w2"], (stride, stride),
                                     ((1, 1), (1, 1)), dimension_numbers=dn)
    h = jnp.maximum(h * s2 + b2, 0.0)

    s3, b3 = _fold_bn(*params["bn3"])
    out = jax.lax.conv_general_dilated(h, params["w3"].reshape(1, 1, Cmid, Cout),
                                       (1, 1), "VALID", dimension_numbers=dn)
    out = out * s3 + b3

    if "wsc" in params:
        ssc, bsc = _fold_bn(*params["bnsc"])
        sc = jax.lax.conv_general_dilated(x, params["wsc"].reshape(1, 1, Cin, Cout),
                                          (stride, stride), "VALID",
                                          dimension_numbers=dn)
        sc = sc * ssc + bsc
    else:
        sc = x
    out = jnp.maximum(out + sc, 0.0)
    return jnp.transpose(out, (0, 3, 1, 2))


if __name__ == "__main__":
    key = jax.random.PRNGKey(0)
    k_x1, k_p1, k_x2, k_p2 = jax.random.split(key, 4)

    # Case 1: stride=1, in == out -> identity shortcut.
    inc, outc, midc = 32, 32, 8
    x = jax.random.normal(k_x1, (2, inc, 16, 16), jnp.float32)
    params = init_params(k_p1, inc, outc, midc)
    out = jax.block_until_ready(bottleneck_forward(x, params, stride=1))
    ref = reference_forward(x, params, stride=1)
    assert out.shape == (2, outc, 16, 16), out.shape
    assert jnp.allclose(out, ref, atol=1e-4, rtol=1e-4), \
        float(jnp.max(jnp.abs(out - ref)))

    # Case 2: stride=2, in != out -> 1x1 conv shortcut with stride 2.
    inc2, outc2, midc2 = 16, 32, 8
    x2 = jax.random.normal(k_x2, (2, inc2, 16, 16), jnp.float32)
    params2 = init_params(k_p2, inc2, outc2, midc2)
    out2 = jax.block_until_ready(bottleneck_forward(x2, params2, stride=2))
    ref2 = reference_forward(x2, params2, stride=2)
    assert out2.shape == (2, outc2, 8, 8), out2.shape
    assert jnp.allclose(out2, ref2, atol=1e-4, rtol=1e-4), \
        float(jnp.max(jnp.abs(out2 - ref2)))

    print("KERNEL_OK")
</pallas_src>

<mosaic_0001>
module attributes {stable_mosaic.version = 11 : i64} {
  func.func @_bottleneck_s1_kernel(%arg0: i32, %arg1: memref<1x256x32xf32, #tpu.memory_space<vmem>>, %arg2: memref<32x8xf32, #tpu.memory_space<vmem>>, %arg3: memref<1x8xf32, #tpu.memory_space<vmem>>, %arg4: memref<9x8x8xf32, #tpu.memory_space<vmem>>, %arg5: memref<1x8xf32, #tpu.memory_space<vmem>>, %arg6: memref<8x32xf32, #tpu.memory_space<vmem>>, %arg7: memref<1x32xf32, #tpu.memory_space<vmem>>, %arg8: memref<1x256x32xf32, #tpu.memory_space<vmem>>, %arg9: memref<18x18x8xf32, #tpu.memory_space<vmem>>) attributes {dimension_semantics = [#tpu.dimension_semantics<parallel>], iteration_bounds = array<i64: 2>, scalar_prefetch = 0 : i64, scratch_operands = 1 : i64, tpu.core_type = #tpu.core_type<tc>, window_params = [{transform_indices = @transform_0, window_bounds = array<i64: 1, 256, 32>}, {pipeline_mode = #tpu.pipeline_mode<synchronous>, transform_indices = @transform_1, window_bounds = array<i64: 32, 8>}, {pipeline_mode = #tpu.pipeline_mode<synchronous>, transform_indices = @transform_2, window_bounds = array<i64: 1, 8>}, {pipeline_mode = #tpu.pipeline_mode<synchronous>, transform_indices = @transform_3, window_bounds = array<i64: 9, 8, 8>}, {pipeline_mode = #tpu.pipeline_mode<synchronous>, transform_indices = @transform_4, window_bounds = array<i64: 1, 8>}, {pipeline_mode = #tpu.pipeline_mode<synchronous>, transform_indices = @transform_5, window_bounds = array<i64: 8, 32>}, {pipeline_mode = #tpu.pipeline_mode<synchronous>, transform_indices = @transform_6, window_bounds = array<i64: 1, 32>}, {transform_indices = @transform_7, window_bounds = array<i64: 1, 256, 32>}]} {
    %c0 = arith.constant 0 : index
    %c0_0 = arith.constant 0 : index
    %c0_1 = arith.constant 0 : index
    %0 = vector.load %arg1[%c0, %c0_0, %c0_1] : memref<1x256x32xf32, #tpu.memory_space<vmem>>, vector<1x256x32xf32>
    %1 = vector.shape_cast %0 : vector<1x256x32xf32> to vector<256x32xf32>
    %c0_2 = arith.constant 0 : index
    %c0_3 = arith.constant 0 : index
    %2 = vector.load %arg2[%c0_2, %c0_3] : memref<32x8xf32, #tpu.memory_space<vmem>>, vector<32x8xf32>
    %cst = arith.constant dense<0.000000e+00> : vector<256x8xf32>
    %3 = tpu.matmul %1, %2, %cst {dimension_numbers = #tpu.dot_dimension_numbers<[1], [0], [0], [1], [0, 0, 1, 1], [], []>} : vector<256x32xf32>, vector<32x8xf32>, vector<256x8xf32> -> vector<256x8xf32>
    %c0_4 = arith.constant 0 : index
    %c0_5 = arith.constant 0 : index
    %4 = vector.load %arg3[%c0_4, %c0_5] : memref<1x8xf32, #tpu.memory_space<vmem>>, vector<1x8xf32>
    %5 = vector.broadcast %4 : vector<1x8xf32> to vector<256x8xf32>
    %6 = arith.addf %3, %5 : vector<256x8xf32>
    %cst_6 = arith.constant 0.000000e+00 : f32
    %7 = vector.broadcast %cst_6 : f32 to vector<256x8xf32>
    %8 = arith.maximumf %6, %7 : vector<256x8xf32>
    %cst_7 = arith.constant 0.000000e+00 : f32
    %9 = vector.broadcast %cst_7 : f32 to vector<18x18x8xf32>
    %c0_8 = arith.constant 0 : index
    %c0_9 = arith.constant 0 : index
    %c0_10 = arith.constant 0 : index
    %10 = vector.load %arg9[%c0_8, %c0_9, %c0_10] : memref<18x18x8xf32, #tpu.memory_space<vmem>>, vector<18x18x8xf32>
    tpu.vector_store %arg9[%c0_8, %c0_9, %c0_10], %9 {strides = array<i32>} : memref<18x18x8xf32, #tpu.memory_space<vmem>>, vector<18x18x8xf32>,
    %11 = vector.shape_cast %8 : vector<256x8xf32> to vector<16x16x8xf32>
    %c1 = arith.constant 1 : index
    %c1_11 = arith.constant 1 : index
    %c0_12 = arith.constant 0 : index
    %12 = vector.load %arg9[%c1, %c1_11, %c0_12] : memref<18x18x8xf32, #tpu.memory_space<vmem>>, vector<16x16x8xf32>
    tpu.vector_store %arg9[%c1, %c1_11, %c0_12], %11 {strides = array<i32>} : memref<18x18x8xf32, #tpu.memory_space<vmem>>, vector<16x16x8xf32>,
    %c0_13 = arith.constant 0 : index
    %c0_14 = arith.constant 0 : index
    %c0_15 = arith.constant 0 : index
    %13 = vector.load %arg9[%c0_13, %c0_14, %c0_15] : memref<18x18x8xf32, #tpu.memory_space<vmem>>, vector<16x16x8xf32>
    %14 = vector.shape_cast %13 : vector<16x16x8xf32> to vector<256x8xf32>
    %c0_16 = arith.constant 0 : index
    %c0_17 = arith.constant 0 : index
    %c0_18 = arith.constant 0 : index
    %15 = vector.load %arg4[%c0_16, %c0_17, %c0_18] : memref<9x8x8xf32, #tpu.memory_space<vmem>>, vector<1x8x8xf32>
    %16 = vector.shape_cast %15 : vector<1x8x8xf32> to vector<8x8xf32>
    %cst_19 = arith.constant dense<0.000000e+00> : vector<256x8xf32>
    %17 = tpu.matmul %14, %16, %cst_19 {dimension_numbers = #tpu.dot_dimension_numbers<[1], [0], [0], [1], [0, 0, 1, 1], [], []>} : vector<256x8xf32>, vector<8x8xf32>, vector<256x8xf32> -> vector<256x8xf32>
    %c0_20 = arith.constant 0 : index
    %c1_21 = arith.constant 1 : index
    %c0_22 = arith.constant 0 : index
    %18 = vector.load %arg9[%c0_20, %c1_21, %c0_22] : memref<18x18x8xf32, #tpu.memory_space<vmem>>, vector<16x16x8xf32>
    %19 = vector.shape_cast %18 : vector<16x16x8xf32> to vector<256x8xf32>
    %c1_23 = arith.constant 1 : index
    %c0_24 = arith.constant 0 : index
    %c0_25 = arith.constant 0 : index
    %20 = vector.load %arg4[%c1_23, %c0_24, %c0_25] : memref<9x8x8xf32, #tpu.memory_space<vmem>>, vector<1x8x8xf32>
    %21 = vector.shape_cast %20 : vector<1x8x8xf32> to vector<8x8xf32>
    %cst_26 = arith.constant dense<0.000000e+00> : vector<256x8xf32>
    %22 = tpu.matmul %19, %21, %cst_26 {dimension_numbers = #tpu.dot_dimension_numbers<[1], [0], [0], [1], [0, 0, 1, 1], [], []>} : vector<256x8xf32>, vector<8x8xf32>, vector<256x8xf32> -> vector<256x8xf32>
    %23 = arith.addf %17, %22 : vector<256x8xf32>
    %c0_27 = arith.constant 0 : index
    %c2 = arith.constant 2 : index
    %c0_28 = arith.constant 0 : index
    %24 = vector.load %arg9[%c0_27, %c2, %c0_28] : memref<18x18x8xf32, #tpu.memory_space<vmem>>, vector<16x16x8xf32>
    %25 = vector.shape_cast %24 : vector<16x16x8xf32> to vector<256x8xf32>
    %c2_29 = arith.constant 2 : index
    %c0_30 = arith.constant 0 : index
    %c0_31 = arith.constant 0 : index
    %26 = vector.load %arg4[%c2_29, %c0_30, %c0_31] : memref<9x8x8xf32, #tpu.memory_space<vmem>>, vector<1x8x8xf32>
    %27 = vector.shape_cast %26 : vector<1x8x8xf32> to vector<8x8xf32>
    %cst_32 = arith.constant dense<0.000000e+00> : vector<256x8xf32>
    %28 = tpu.matmul %25, %27, %cst_32 {dimension_numbers = #tpu.dot_dimension_numbers<[1], [0], [0], [1], [0, 0, 1, 1], [], []>} : vector<256x8xf32>, vector<8x8xf32>, vector<256x8xf32> -> vector<256x8xf32>
    %29 = arith.addf %23, %28 : vector<256x8xf32>
    %c1_33 = arith.constant 1 : index
    %c0_34 = arith.constant 0 : index
    %c0_35 = arith.constant 0 : index
    %30 = vector.load %arg9[%c1_33, %c0_34, %c0_35] : memref<18x18x8xf32, #tpu.memory_space<vmem>>, vector<16x16x8xf32>
    %31 = vector.shape_cast %30 : vector<16x16x8xf32> to vector<256x8xf32>
    %c3 = arith.constant 3 : index
    %c0_36 = arith.constant 0 : index
    %c0_37 = arith.constant 0 : index
    %32 = vector.load %arg4[%c3, %c0_36, %c0_37] : memref<9x8x8xf32, #tpu.memory_space<vmem>>, vector<1x8x8xf32>
    %33 = vector.shape_cast %32 : vector<1x8x8xf32> to vector<8x8xf32>
    %cst_38 = arith.constant dense<0.000000e+00> : vector<256x8xf32>
    %34 = tpu.matmul %31, %33, %cst_38 {dimension_numbers = #tpu.dot_dimension_numbers<[1], [0], [0], [1], [0, 0, 1, 1], [], []>} : vector<256x8xf32>, vector<8x8xf32>, vector<256x8xf32> -> vector<256x8xf32>
    %35 = arith.addf %29, %34 : vector<256x8xf32>
    %c1_39 = arith.constant 1 : index
    %c1_40 = arith.constant 1 : index
    %c0_41 = arith.constant 0 : index
    %36 = vector.load %arg9[%c1_39, %c1_40, %c0_41] : memref<18x18x8xf32, #tpu.memory_space<vmem>>, vector<16x16x8xf32>
    %37 = vector.shape_cast %36 : vector<16x16x8xf32> to vector<256x8xf32>
    %c4 = arith.constant 4 : index
    %c0_42 = arith.constant 0 : index
    %c0_43 = arith.constant 0 : index
    %38 = vector.load %arg4[%c4, %c0_42, %c0_43] : memref<9x8x8xf32, #tpu.memory_space<vmem>>, vector<1x8x8xf32>
    %39 = vector.shape_cast %38 : vector<1x8x8xf32> to vector<8x8xf32>
    %cst_44 = arith.constant dense<0.000000e+00> : vector<256x8xf32>
    %40 = tpu.matmul %37, %39, %cst_44 {dimension_numbers = #tpu.dot_dimension_numbers<[1], [0], [0], [1], [0, 0, 1, 1], [], []>} : vector<256x8xf32>, vector<8x8xf32>, vector<256x8xf32> -> vector<256x8xf32>
    %41 = arith.addf %35, %40 : vector<256x8xf32>
    %c1_45 = arith.constant 1 : index
    %c2_46 = arith.constant 2 : index
    %c0_47 = arith.constant 0 : index
    %42 = vector.load %arg9[%c1_45, %c2_46, %c0_47] : memref<18x18x8xf32, #tpu.memory_space<vmem>>, vector<16x16x8xf32>
    %43 = vector.shape_cast %42 : vector<16x16x8xf32> to vector<256x8xf32>
    %c5 = arith.constant 5 : index
    %c0_48 = arith.constant 0 : index
    %c0_49 = arith.constant 0 : index
    %44 = vector.load %arg4[%c5, %c0_48, %c0_49] : memref<9x8x8xf32, #tpu.memory_space<vmem>>, vector<1x8x8xf32>
    %45 = vector.shape_cast %44 : vector<1x8x8xf32> to vector<8x8xf32>
    %cst_50 = arith.constant dense<0.000000e+00> : vector<256x8xf32>
    %46 = tpu.matmul %43, %45, %cst_50 {dimension_numbers = #tpu.dot_dimension_numbers<[1], [0], [0], [1], [0, 0, 1, 1], [], []>} : vector<256x8xf32>, vector<8x8xf32>, vector<256x8xf32> -> vector<256x8xf32>
    %47 = arith.addf %41, %46 : vector<256x8xf32>
    %c2_51 = arith.constant 2 : index
    %c0_52 = arith.constant 0 : index
    %c0_53 = arith.constant 0 : index
    %48 = vector.load %arg9[%c2_51, %c0_52, %c0_53] : memref<18x18x8xf32, #tpu.memory_space<vmem>>, vector<16x16x8xf32>
    %49 = vector.shape_cast %48 : vector<16x16x8xf32> to vector<256x8xf32>
    %c6 = arith.constant 6 : index
    %c0_54 = arith.constant 0 : index
    %c0_55 = arith.constant 0 : index
    %50 = vector.load %arg4[%c6, %c0_54, %c0_55] : memref<9x8x8xf32, #tpu.memory_space<vmem>>, vector<1x8x8xf32>
    %51 = vector.shape_cast %50 : vector<1x8x8xf32> to vector<8x8xf32>
    %cst_56 = arith.constant dense<0.000000e+00> : vector<256x8xf32>
    %52 = tpu.matmul %49, %51, %cst_56 {dimension_numbers = #tpu.dot_dimension_numbers<[1], [0], [0], [1], [0, 0, 1, 1], [], []>} : vector<256x8xf32>, vector<8x8xf32>, vector<256x8xf32> -> vector<256x8xf32>
    %53 = arith.addf %47, %52 : vector<256x8xf32>
    %c2_57 = arith.constant 2 : index
    %c1_58 = arith.constant 1 : index
    %c0_59 = arith.constant 0 : index
    %54 = vector.load %arg9[%c2_57, %c1_58, %c0_59] : memref<18x18x8xf32, #tpu.memory_space<vmem>>, vector<16x16x8xf32>
    %55 = vector.shape_cast %54 : vector<16x16x8xf32> to vector<256x8xf32>
    %c7 = arith.constant 7 : index
    %c0_60 = arith.constant 0 : index
    %c0_61 = arith.constant 0 : index
    %56 = vector.load %arg4[%c7, %c0_60, %c0_61] : memref<9x8x8xf32, #tpu.memory_space<vmem>>, vector<1x8x8xf32>
    %57 = vector.shape_cast %56 : vector<1x8x8xf32> to vector<8x8xf32>
    %cst_62 = arith.constant dense<0.000000e+00> : vector<256x8xf32>
    %58 = tpu.matmul %55, %57, %cst_62 {dimension_numbers = #tpu.dot_dimension_numbers<[1], [0], [0], [1], [0, 0, 1, 1], [], []>} : vector<256x8xf32>, vector<8x8xf32>, vector<256x8xf32> -> vector<256x8xf32>
    %59 = arith.addf %53, %58 : vector<256x8xf32>
    %c2_63 = arith.constant 2 : index
    %c2_64 = arith.constant 2 : index
    %c0_65 = arith.constant 0 : index
    %60 = vector.load %arg9[%c2_63, %c2_64, %c0_65] : memref<18x18x8xf32, #tpu.memory_space<vmem>>, vector<16x16x8xf32>
    %61 = vector.shape_cast %60 : vector<16x16x8xf32> to vector<256x8xf32>
    %c8 = arith.constant 8 : index
    %c0_66 = arith.constant 0 : index
    %c0_67 = arith.constant 0 : index
    %62 = vector.load %arg4[%c8, %c0_66, %c0_67] : memref<9x8x8xf32, #tpu.memory_space<vmem>>, vector<1x8x8xf32>
    %63 = vector.shape_cast %62 : vector<1x8x8xf32> to vector<8x8xf32>
    %cst_68 = arith.constant dense<0.000000e+00> : vector<256x8xf32>
    %64 = tpu.matmul %61, %63, %cst_68 {dimension_numbers = #tpu.dot_dimension_numbers<[1], [0], [0], [1], [0, 0, 1, 1], [], []>} : vector<256x8xf32>, vector<8x8xf32>, vector<256x8xf32> -> vector<256x8xf32>
    %65 = arith.addf %59, %64 : vector<256x8xf32>
    %c0_69 = arith.constant 0 : index
    %c0_70 = arith.constant 0 : index
    %66 = vector.load %arg5[%c0_69, %c0_70] : memref<1x8xf32, #tpu.memory_space<vmem>>, vector<1x8xf32>
    %67 = vector.broadcast %66 : vector<1x8xf32> to vector<256x8xf32>
    %68 = arith.addf %65, %67 : vector<256x8xf32>
    %cst_71 = arith.constant 0.000000e+00 : f32
    %69 = vector.broadcast %cst_71 : f32 to vector<256x8xf32>
    %70 = arith.maximumf %68, %69 : vector<256x8xf32>
    %c0_72 = arith.constant 0 : index
    %c0_73 = arith.constant 0 : index
    %71 = vector.load %arg6[%c0_72, %c0_73] : memref<8x32xf32, #tpu.memory_space<vmem>>, vector<8x32xf32>
    %cst_74 = arith.constant dense<0.000000e+00> : vector<256x32xf32>
    %72 = tpu.matmul %70, %71, %cst_74 {dimension_numbers = #tpu.dot_dimension_numbers<[1], [0], [0], [1], [0, 0, 1, 1], [], []>} : vector<256x8xf32>, vector<8x32xf32>, vector<256x32xf32> -> vector<256x32xf32>
    %c0_75 = arith.constant 0 : index
    %c0_76 = arith.constant 0 : index
    %73 = vector.load %arg7[%c0_75, %c0_76] : memref<1x32xf32, #tpu.memory_space<vmem>>, vector<1x32xf32>
    %74 = vector.broadcast %73 : vector<1x32xf32> to vector<256x32xf32>
    %75 = arith.addf %72, %74 : vector<256x32xf32>
    %76 = arith.addf %75, %1 : vector<256x32xf32>
    %cst_77 = arith.constant 0.000000e+00 : f32
    %77 = vector.broadcast %cst_77 : f32 to vector<256x32xf32>
    %78 = arith.maximumf %76, %77 : vector<256x32xf32>
    %c0_78 = arith.constant 0 : index
    %c0_79 = arith.constant 0 : index
    %c0_80 = arith.constant 0 : index
    %79 = vector.load %arg8[%c0_78, %c0_79, %c0_80] : memref<1x256x32xf32, #tpu.memory_space<vmem>>, vector<1x256x32xf32>
    %80 = vector.shape_cast %79 : vector<1x256x32xf32> to vector<256x32xf32>
    %81 = vector.shape_cast %78 : vector<256x32xf32> to vector<1x256x32xf32>
    tpu.vector_store %arg8[%c0_78, %c0_79, %c0_80], %81 {strides = array<i32>} : memref<1x256x32xf32, #tpu.memory_space<vmem>>, vector<1x256x32xf32>,
    return
  }
  func.func @transform_0(%arg0: i32) -> (i32, i32, i32) {
    %c0_i32 = arith.constant 0 : i32
    %c0_i32_0 = arith.constant 0 : i32
    %c0_i32_1 = arith.constant 0 : i32
    return %arg0, %c0_i32, %c0_i32_0 : i32, i32, i32
  }
  func.func @transform_1(%arg0: i32) -> (i32, i32) {
    %c0_i32 = arith.constant 0 : i32
    %c0_i32_0 = arith.constant 0 : i32
    %c0_i32_1 = arith.constant 0 : i32
    return %c0_i32, %c0_i32_0 : i32, i32
  }
  func.func @transform_2(%arg0: i32) -> (i32, i32) {
    %c0_i32 = arith.constant 0 : i32
    %c0_i32_0 = arith.constant 0 : i32
    %c0_i32_1 = arith.constant 0 : i32
    return %c0_i32, %c0_i32_0 : i32, i32
  }
  func.func @transform_3(%arg0: i32) -> (i32, i32, i32) {
    %c0_i32 = arith.constant 0 : i32
    %c0_i32_0 = arith.constant 0 : i32
    %c0_i32_1 = arith.constant 0 : i32
    %c0_i32_2 = arith.constant 0 : i32
    return %c0_i32, %c0_i32_0, %c0_i32_1 : i32, i32, i32
  }
  func.func @transform_4(%arg0: i32) -> (i32, i32) {
    %c0_i32 = arith.constant 0 : i32
    %c0_i32_0 = arith.constant 0 : i32
    %c0_i32_1 = arith.constant 0 : i32
    return %c0_i32, %c0_i32_0 : i32, i32
  }
  func.func @transform_5(%arg0: i32) -> (i32, i32) {
    %c0_i32 = arith.constant 0 : i32
    %c0_i32_0 = arith.constant 0 : i32
    %c0_i32_1 = arith.constant 0 : i32
    return %c0_i32, %c0_i32_0 : i32, i32
  }
  func.func @transform_6(%arg0: i32) -> (i32, i32) {
    %c0_i32 = arith.constant 0 : i32
    %c0_i32_0 = arith.constant 0 : i32
    %c0_i32_1 = arith.constant 0 : i32
    return %c0_i32, %c0_i32_0 : i32, i32
  }
  func.func @transform_7(%arg0: i32) -> (i32, i32, i32) {
    %c0_i32 = arith.constant 0 : i32
    %c0_i32_0 = arith.constant 0 : i32
    %c0_i32_1 = arith.constant 0 : i32
    return %arg0, %c0_i32, %c0_i32_0 : i32, i32, i32
  }
}

</mosaic_0001>

<bundles_post_ra>
// kernel: tpu_custom_call.1
= control target key start
LH: loop header
LB: loop body
LE: loop exit
PB: predicated region body
PF: predicated region fallthrough
CT: control target
= control target key end

     0   :  { %s6389_s24 = smov 0   ;;  %s7664_s0 = inlined_call_operand.vmem [shape: f32[2,256,32], index: 0, kind: input, shape index: {}]   ;;  %s7665_s1 = inlined_call_operand.vmem [shape: f32[32,8], index: 1, kind: input, shape index: {}]   ;;  %s7666_s2 = inlined_call_operand.vmem [shape: f32[1,8], index: 2, kind: input, shape index: {}]   ;;  %s7667_s3 = inlined_call_operand.vmem [shape: f32[9,8,8], index: 3, kind: input, shape index: {}]   ;;  %s7668_s4 = inlined_call_operand.vmem [shape: f32[1,8], index: 4, kind: input, shape index: {}]   ;;  %s7669_s5 = inlined_call_operand.vmem [shape: f32[8,32], index: 5, kind: input, shape index: {}]   ;;  %s7670_s6 = inlined_call_operand.vmem [shape: f32[1,32], index: 6, kind: input, shape index: {}]   ;;  %s7671_s7 = inlined_call_operand.vmem [shape: f32[2,256,32], index: 7, kind: output, shape index: {}]  }
   0x1 LB: > { %s4735_s25 = sadd.s32 4294967295, %s6346_s24   ;;  %p4739_p0 = scmp.ge.s32.totalorder %s6346_s24, 1  ;;  %s6346_s24 = sphi %s6389_s24, %s17_s24  }
   0x2   : > { %p237_p1 = scmp.lt.s32.totalorder %s6346_s24, 3 }
   0x4   : > { %p238_p2 = pnand %p4739_p0, %p237_p1 }
   0x6   : > { %241 = sbr.rel (%p238_p2) target bundleno = 1071 (0x42f), region = 48 }
   0xd   : > { %v311_v0 = vld [vmem:[%s7665_s1] sm:$0xff]  ;;  %v312_v1 = vld [vmem:[%s7665_s1 + $0x8] sm:$0xff]  ;;  %v313_v2 = vld [vmem:[%s7665_s1 + $0x10] sm:$0xff]  ;;  %p269_p3 = scmp.lt.s32.totalorder %s4735_s25, 1  ;;  %vm322_vm0 = vcmask 261120   ;;  %vm676_vm1 = vcmask 64512  }
   0xe   : > { %v6033_v3 = vpack.c.bf16 %v312_v1, %v311_v0  ;;  %v314_v4 = vld [vmem:[%s7665_s1 + $0x18] sm:$0xff]  ;;  %vm679_vm2 = vcmask 58368   ;;  %v6348_v38 = vmov 0.0   ;;  %v4777_v39 = vld [vmem:[%s7667_s3 + $0x8] sm:$0xff]  ;;  %v6552_v43 = vld [vmem:[%s7667_s3 + $0x20] sm:$0xff] }
   0xf   : > { %v6037_v5 = vpack.c.bf16 %v314_v4, %v313_v2  ;;  %s7724_s25 = smov (!%p269_p3, %s4735_s25), 1  ;;  %682 = vst.msk [vmem:[#allocation2 + $0x20] sm:$0xff] %vm676_vm1, %v6348_v38  ;;  %677 = vst.msk [vmem:[#allocation2] sm:$0xff] %vm676_vm1, %v6348_v38  ;;  %v6545_v42 = vld [vmem:[%s7667_s3 + $0x18] sm:$0xff]  ;;  %v797_v44 = vld [vmem:[%s7667_s3] sm:$0xff] }
  0x10   : > { %6034 = vmatprep.subr.bf16.mxu0 %v6033_v3  ;;  %s5109_s11 = sshll.u32 %s7724_s25, 8  ;;  %678 = vst.msk [vmem:[#allocation2 + $0x8] sm:$0xff] %vm676_vm1, %v6348_v38  ;;  %681 = vst.msk [vmem:[#allocation2 + $0x18] sm:$0xff] %vm676_vm1, %v6348_v38  ;;  %6041 = vmatprep.subr.mxu1 %v6545_v42  ;;  %v6561_v45 = vld [vmem:[%s7666_s2] ss:$0 sm:$0xff]  ;;  %v6572_v59 = vld [vmem:[%s7667_s3 + $0x10] sm:$0xff] }
  0x11   : > { %6036 = vmatpush3.bf16.msra.mxu0 %v6033_v3  ;;  %s6417_s14 = scalar_lea.vmem %s7664_s0, %s5109_s11  ;;  %684 = vst.msk [vmem:[#allocation2 + $0x30] sm:$0xff] %vm676_vm1, %v6348_v38  ;;  %685 = vst.msk [vmem:[#allocation2 + $0x38] sm:$0xff] %vm676_vm1, %v6348_v38  ;;  %6042 = vmatpush3.msra.mxu1 %v6545_v42  ;;  %s7534_s26 = scalar_lea.vmem %s7671_s7, %s5109_s11 }
  0x12   : > { %6038 = vmatprep.subr.bf16.mxu0 %v6037_v5  ;;  %v279_v6 = vld [vmem:[%s6417_s14] sm:$0xff]  ;;  %v280_v7 = vld [vmem:[%s6417_s14 + $0x8] sm:$0xff]  ;;  %v281_v8 = vld [vmem:[%s6417_s14 + $0x10] sm:$0xff]  ;;  %687 = vst.msk [vmem:[#allocation2 + $0x48] sm:$0xff] %vm676_vm1, %v6348_v38  ;;  %5733 = vmatprep.subr.mxu1 %v6552_v43 }
  0x13   : > { %5485 = vmatprep.mubr.msk.f32.mxu0 %vm322_vm0, %v279_v6  ;;  %v282_v9 = vld [vmem:[%s6417_s14 + $0x18] sm:$0xff]  ;;  %v283_v10 = vld [vmem:[%s6417_s14 + $0x20] sm:$0xff]  ;;  %v284_v11 = vld [vmem:[%s6417_s14 + $0x28] sm:$0xff]  ;;  %688 = vst.msk [vmem:[#allocation2 + $0x50] sm:$0xff] %vm676_vm1, %v6348_v38 }
  0x14   : > { %v285_v12 = vld [vmem:[%s6417_s14 + $0x30] sm:$0xff]  ;;  %v286_v13 = vld [vmem:[%s6417_s14 + $0x38] sm:$0xff]  ;;  %v287_v14 = vld [vmem:[%s6417_s14 + $0x40] sm:$0xff]  ;;  %690 = vst.msk [vmem:[#allocation2 + $0x60] sm:$0xff] %vm676_vm1, %v6348_v38 }
  0x15   : > { %6040 = vmatpush3.bf16.msra.mxu0 %v6037_v5  ;;  %v288_v15 = vld [vmem:[%s6417_s14 + $0x48] sm:$0xff]  ;;  %v289_v16 = vld [vmem:[%s6417_s14 + $0x50] sm:$0xff]  ;;  %v290_v17 = vld [vmem:[%s6417_s14 + $0x58] sm:$0xff]  ;;  %691 = vst.msk [vmem:[#allocation2 + $0x68] sm:$0xff] %vm676_vm1, %v6348_v38 }
  0x16   : > { %v291_v18 = vld [vmem:[%s6417_s14 + $0x60] sm:$0xff]  ;;  %v292_v19 = vld [vmem:[%s6417_s14 + $0x68] sm:$0xff]  ;;  %v293_v20 = vld [vmem:[%s6417_s14 + $0x70] sm:$0xff]  ;;  %693 = vst.msk [vmem:[#allocation2 + $0x78] sm:$0xff] %vm676_vm1, %v6348_v38  ;;  %5533 = vmatprep.subr.mxu0 %v4777_v39 }
  0x17   : > { %v294_v21 = vld [vmem:[%s6417_s14 + $0x78] sm:$0xff]  ;;  %v295_v22 = vld [vmem:[%s6417_s14 + $0x80] sm:$0xff]  ;;  %v296_v23 = vld [vmem:[%s6417_s14 + $0x88] sm:$0xff]  ;;  %694 = vst.msk [vmem:[#allocation2 + $0x80] sm:$0xff] %vm676_vm1, %v6348_v38 }
  0x18   : > { %5486 = vmatmul.mubr.msk.f32.vlgmr.msra.gmra.mrb[0].mxu0 %vm322_vm0, %v280_v7  ;;  %v297_v24 = vld [vmem:[%s6417_s14 + $0x90] sm:$0xff]  ;;  %v298_v25 = vld [vmem:[%s6417_s14 + $0x98] sm:$0xff]  ;;  %v299_v26 = vld [vmem:[%s6417_s14 + $0xa0] sm:$0xff]  ;;  %696 = vst.msk [vmem:[#allocation2 + $0x90] sm:$0xff] %vm676_vm1, %v6348_v38 }
  0x19   : > { %5488 = vmatprep.mubr.msk.f32.mxu0 %vm322_vm0, %v281_v8  ;;  %v300_v27 = vld [vmem:[%s6417_s14 + $0xa8] sm:$0xff]  ;;  %v301_v28 = vld [vmem:[%s6417_s14 + $0xb0] sm:$0xff]  ;;  %v302_v29 = vld [vmem:[%s6417_s14 + $0xb8] sm:$0xff]  ;;  %697 = vst.msk [vmem:[#allocation2 + $0x98] sm:$0xff] %vm676_vm1, %v6348_v38  ;;  %5534 = vmatpush3.msra.mxu0 %v4777_v39 }
  0x1a   : > { %v303_v30 = vld [vmem:[%s6417_s14 + $0xc0] sm:$0xff]  ;;  %v304_v31 = vld [vmem:[%s6417_s14 + $0xc8] sm:$0xff]  ;;  %v305_v32 = vld [vmem:[%s6417_s14 + $0xd0] sm:$0xff]  ;;  %699 = vst.msk [vmem:[#allocation2 + $0xa8] sm:$0xff] %vm676_vm1, %v6348_v38  ;;  %5583 = vmatprep.subr.mxu0 %v797_v44 }
  0x1b   : > { %v306_v33 = vld [vmem:[%s6417_s14 + $0xd8] sm:$0xff]  ;;  %v307_v34 = vld [vmem:[%s6417_s14 + $0xe0] sm:$0xff]  ;;  %v308_v35 = vld [vmem:[%s6417_s14 + $0xe8] sm:$0xff]  ;;  %700 = vst.msk [vmem:[#allocation2 + $0xb0] sm:$0xff] %vm676_vm1, %v6348_v38 }
  0x1c   : > { %5489 = vmatmul.mubr.msk.f32.gmra.mrb[2].mxu0 %vm322_vm0, %v282_v9  ;;  %v309_v36 = vld [vmem:[%s6417_s14 + $0xf0] sm:$0xff]  ;;  %v310_v37 = vld [vmem:[%s6417_s14 + $0xf8] sm:$0xff]  ;;  %702 = vst.msk [vmem:[#allocation2 + $0xc0] sm:$0xff] %vm676_vm1, %v6348_v38  ;;  %703 = vst.msk [vmem:[#allocation2 + $0xc8] sm:$0xff] %vm676_vm1, %v6348_v38 }
  0x1d   : > { %5491 = vmatprep.mubr.msk.f32.mxu0 %vm322_vm0, %v283_v10  ;;  %705 = vst.msk [vmem:[#allocation2 + $0xd8] sm:$0xff] %vm676_vm1, %v6348_v38  ;;  %706 = vst.msk [vmem:[#allocation2 + $0xe0] sm:$0xff] %vm676_vm1, %v6348_v38  ;;  %v798_v40 = vld [vmem:[#allocation2 + $0x1] sm:$0xff] }
  0x1e   : > { %708 = vst.msk [vmem:[#allocation2 + $0xf0] sm:$0xff] %vm676_vm1, %v6348_v38  ;;  %709 = vst.msk [vmem:[#allocation2 + $0xf8] sm:$0xff] %vm676_vm1, %v6348_v38 }
  0x1f   : > { %711 = vst.msk [vmem:[#allocation2 + $0x108] sm:$0xff] %vm676_vm1, %v6348_v38  ;;  %712 = vst.msk [vmem:[#allocation2 + $0x110] sm:$0xff] %vm676_vm1, %v6348_v38 }
  0x20   : > { %5492 = vmatmul.mubr.msk.f32.gmra.mrb[4].mxu0 %vm322_vm0, %v284_v11  ;;  %714 = vst.msk [vmem:[#allocation2 + $0x120] sm:$0xff] %vm676_vm1, %v6348_v38  ;;  %715 = vst.msk [vmem:[#allocation2 + $0x128] sm:$0xff] %vm676_vm1, %v6348_v38 }
  0x21   : > { %5494 = vmatprep.mubr.msk.f32.mxu0 %vm322_vm0, %v285_v12  ;;  %717 = vst.msk [vmem:[#allocation2 + $0x138] sm:$0xff] %vm676_vm1, %v6348_v38  ;;  %718 = vst.msk [vmem:[#allocation2 + $0x140] sm:$0xff] %vm676_vm1, %v6348_v38 }
  0x22   : > { %720 = vst.msk [vmem:[#allocation2 + $0x150] sm:$0xff] %vm676_vm1, %v6348_v38  ;;  %721 = vst.msk [vmem:[#allocation2 + $0x158] sm:$0xff] %vm676_vm1, %v6348_v38 }
  0x23   : > { %723 = vst.msk [vmem:[#allocation2 + $0x168] sm:$0xff] %vm676_vm1, %v6348_v38  ;;  %724 = vst.msk [vmem:[#allocation2 + $0x170] sm:$0xff] %vm676_vm1, %v6348_v38 }
  0x24   : > { %5495 = vmatmul.mubr.msk.f32.gmra.mrb[6].mxu0 %vm322_vm0, %v286_v13  ;;  %726 = vst.msk [vmem:[#allocation2 + $0x180] sm:$0xff] %vm676_vm1, %v6348_v38  ;;  %727 = vst.msk [vmem:[#allocation2 + $0x188] sm:$0xff] %vm676_vm1, %v6348_v38 }
  0x25   : > { %5497 = vmatprep.mubr.msk.f32.mxu0 %vm322_vm0, %v287_v14  ;;  %729 = vst.msk [vmem:[#allocation2 + $0x198] sm:$0xff] %vm676_vm1, %v6348_v38  ;;  %730 = vst.msk [vmem:[#allocation2 + $0x1a0] sm:$0xff] %vm676_vm1, %v6348_v38 }
  0x26   : > { %683 = vst.msk [vmem:[#allocation2 + $0x28] sm:$0x3] %vm679_vm2, %v6348_v38  ;;  %680 = vst.msk [vmem:[#allocation2 + $0x10] sm:$0x3] %vm679_vm2, %v6348_v38 }
  0x27   : > { %686 = vst.msk [vmem:[#allocation2 + $0x40] sm:$0x3] %vm679_vm2, %v6348_v38  ;;  %689 = vst.msk [vmem:[#allocation2 + $0x58] sm:$0x3] %vm679_vm2, %v6348_v38 }
  0x28   : > { %5498 = vmatmul.mubr.msk.f32.gmra.mrb[8].mxu0 %vm322_vm0, %v288_v15  ;;  %692 = vst.msk [vmem:[#allocation2 + $0x70] sm:$0x3] %vm679_vm2, %v6348_v38  ;;  %695 = vst.msk [vmem:[#allocation2 + $0x88] sm:$0x3] %vm679_vm2, %v6348_v38 }
  0x29   : > { %5500 = vmatprep.mubr.msk.f32.mxu0 %vm322_vm0, %v289_v16  ;;  %698 = vst.msk [vmem:[#allocation2 + $0xa0] sm:$0x3] %vm679_vm2, %v6348_v38  ;;  %701 = vst.msk [vmem:[#allocation2 + $0xb8] sm:$0x3] %vm679_vm2, %v6348_v38 }
  0x2a   : > { %704 = vst.msk [vmem:[#allocation2 + $0xd0] sm:$0x3] %vm679_vm2, %v6348_v38  ;;  %707 = vst.msk [vmem:[#allocation2 + $0xe8] sm:$0x3] %vm679_vm2, %v6348_v38 }
  0x2b   : > { %710 = vst.msk [vmem:[#allocation2 + $0x100] sm:$0x3] %vm679_vm2, %v6348_v38  ;;  %713 = vst.msk [vmem:[#allocation2 + $0x118] sm:$0x3] %vm679_vm2, %v6348_v38 }
  0x2c   : > { %5501 = vmatmul.mubr.msk.f32.gmra.mrb[10].mxu0 %vm322_vm0, %v290_v17  ;;  %716 = vst.msk [vmem:[#allocation2 + $0x130] sm:$0x3] %vm679_vm2, %v6348_v38  ;;  %719 = vst.msk [vmem:[#allocation2 + $0x148] sm:$0x3] %vm679_vm2, %v6348_v38 }
  0x2d   : > { %5503 = vmatprep.mubr.msk.f32.mxu0 %vm322_vm0, %v291_v18  ;;  %722 = vst.msk [vmem:[#allocation2 + $0x160] sm:$0x3] %vm679_vm2, %v6348_v38  ;;  %725 = vst.msk [vmem:[#allocation2 + $0x178] sm:$0x3] %vm679_vm2, %v6348_v38  ;;  %v799_v41 = vld [vmem:[#allocation2 + $0x9] sm:$0xff] }
  0x2e   : > { %728 = vst.msk [vmem:[#allocation2 + $0x190] sm:$0x3] %vm679_vm2, %v6348_v38  ;;  %731 = vst.msk [vmem:[#allocation2 + $0x1a8] sm:$0x3] %vm679_vm2, %v6348_v38 }
  0x30   : > { %5504 = vmatmul.mubr.msk.f32.gmra.mrb[12].mxu0 %vm322_vm0, %v292_v19 }
  0x31   : > { %5506 = vmatprep.mubr.msk.f32.mxu0 %vm322_vm0, %v293_v20 }
  0x34   : > { %5507 = vmatmul.mubr.msk.f32.gmra.mrb[14].mxu0 %vm322_vm0, %v294_v21 }
  0x35   : > { %5509 = vmatprep.mubr.msk.f32.mxu0 %vm322_vm0, %v295_v22 }
  0x38   : > { %5510 = vmatmul.mubr.msk.f32.gmra.mrb[16].mxu0 %vm322_vm0, %v296_v23 }
  0x39   : > { %5512 = vmatprep.mubr.msk.f32.mxu0 %vm322_vm0, %v297_v24 }
  0x3c   : > { %5513 = vmatmul.mubr.msk.f32.gmra.mrb[18].mxu0 %vm322_vm0, %v298_v25 }
  0x3d   : > { %5515 = vmatprep.mubr.msk.f32.mxu0 %vm322_vm0, %v299_v26 }
  0x40   : > { %5516 = vmatmul.mubr.msk.f32.gmra.mrb[20].mxu0 %vm322_vm0, %v300_v27 }
  0x41   : > { %5518 = vmatprep.mubr.msk.f32.mxu0 %vm322_vm0, %v301_v28 }
  0x44   : > { %5519 = vmatmul.mubr.msk.f32.gmra.mrb[22].mxu0 %vm322_vm0, %v302_v29 }
  0x45   : > { %5521 = vmatprep.mubr.msk.f32.mxu0 %vm322_vm0, %v303_v30 }
  0x48   : > { %5522 = vmatmul.mubr.msk.f32.gmra.mrb[24].mxu0 %vm322_vm0, %v304_v31 }
  0x49   : > { %5524 = vmatprep.mubr.msk.f32.mxu0 %vm322_vm0, %v305_v32 }
  0x4c   : > { %5525 = vmatmul.mubr.msk.f32.gmra.mrb[26].mxu0 %vm322_vm0, %v306_v33 }
  0x4d   : > { %5527 = vmatprep.mubr.msk.f32.mxu0 %vm322_vm0, %v307_v34 }
  0x50   : > { %5528 = vmatmul.mubr.msk.f32.gmra.mrb[28].mxu0 %vm322_vm0, %v308_v35 }
  0x51   : > { %5530 = vmatprep.mubr.msk.f32.mxu0 %vm322_vm0, %v309_v36 }
  0x54   : > { %5531 = vmatmul.mubr.msk.f32.gmra.mrb[30].mxu0 %vm322_vm0, %v310_v37 }
  0x55   : > { %5535 = vmatprep.mubr.msk.f32.mxu0 %vm676_vm1, %v798_v40 }
  0x58   : > { %5536 = vmatmul.mubr.msk.f32.vlgmr.msra.gmra.mrb[32].mxu0 %vm676_vm1, %v799_v41 }
  0x59   : > { %5584 = vmatpush3.msra.mxu0 %v797_v44 }
  0x5a   : > { %5633 = vmatprep.subr.mxu0 %v6572_v59 }
  0xeb   : > { %v5487_v46 = vpop.f32.mrb[0].mxu0 }
  0xec   : > { %v491_v47 = vadd.f32 %v5487_v46, %v6561_v45  ;;  %v485_v48 = vpop.f32.mrb[1].mxu0 }
  0xed   : > { %v486_v49 = vadd.f32 %v6561_v45, %v485_v48 }
  0xee   : > { %v645_v50 = vmax.f32 %v491_v47, 0.0 }
  0xef   : > { %v644_v51 = vmax.f32 %v486_v49, 0.0  ;;  %v5490_v52 = vpop.f32.mrb[2].mxu0 }
  0xf0   : > { %734 = vst.msk [vmem:[#allocation2 + $0x21] sm:$0xff] %vm676_vm1, %v645_v50  ;;  %v501_v53 = vadd.f32 %v5490_v52, %v6561_v45  ;;  %v495_v54 = vpop.f32.mrb[3].mxu0 }
  0xf1   : > { %733 = vst.msk [vmem:[#allocation2 + $0x19] sm:$0xff] %vm676_vm1, %v644_v51  ;;  %v496_v55 = vadd.f32 %v6561_v45, %v495_v54 }
  0xf2   : > { %v647_v56 = vmax.f32 %v501_v53, 0.0 }
  0xf3   : > { %v646_v57 = vmax.f32 %v496_v55, 0.0  ;;  %v5493_v58 = vpop.f32.mrb[4].mxu0 }
  0xf4   : > { %736 = vst.msk [vmem:[#allocation2 + $0x39] sm:$0xff] %vm676_vm1, %v647_v56  ;;  %v511_v60 = vadd.f32 %v5493_v58, %v6561_v45  ;;  %v505_v61 = vpop.f32.mrb[5].mxu0 }
  0xf5   : > { %735 = vst.msk [vmem:[#allocation2 + $0x31] sm:$0xff] %vm676_vm1, %v646_v57  ;;  %v506_v62 = vadd.f32 %v6561_v45, %v505_v61 }
  0xf6   : > { %v649_v63 = vmax.f32 %v511_v60, 0.0 }
  0xf7   : > { %v648_v0 = vmax.f32 %v506_v62, 0.0  ;;  %v5496_v1 = vpop.f32.mrb[6].mxu0  ;;  %v6587_v6 = vld [vmem:[#allocation2 + $0x21] sm:$0xff] }
  0xf8   : > { %738 = vst.msk [vmem:[#allocation2 + $0x51] sm:$0xff] %vm676_vm1, %v649_v63  ;;  %v521_v2 = vadd.f32 %v5496_v1, %v6561_v45  ;;  %v515_v3 = vpop.f32.mrb[7].mxu0  ;;  %v6581_v4 = vld [vmem:[#allocation2 + $0x19] sm:$0xff] }
  0xf9   : > { %737 = vst.msk [vmem:[#allocation2 + $0x49] sm:$0xff] %vm676_vm1, %v648_v0  ;;  %v516_v5 = vadd.f32 %v6561_v45, %v515_v3  ;;  %5538 = vmatprep.mubr.msk.f32.mxu0 %vm676_vm1, %v6581_v4 }
  0xfa   : > { %v651_v7 = vmax.f32 %v521_v2, 0.0  ;;  %5539 = vmatmul.mubr.msk.f32.gmra.mrb[34].mxu0 %vm676_vm1, %v6587_v6 }
  0xfb   : > { %v650_v8 = vmax.f32 %v516_v5, 0.0  ;;  %v5499_v9 = vpop.f32.mrb[8].mxu0  ;;  %v6599_v14 = vld [vmem:[#allocation2 + $0x39] sm:$0xff] }
  0xfc   : > { %740 = vst.msk [vmem:[#allocation2 + $0x69] sm:$0xff] %vm676_vm1, %v651_v7  ;;  %v531_v10 = vadd.f32 %v5499_v9, %v6561_v45  ;;  %v525_v11 = vpop.f32.mrb[9].mxu0  ;;  %v6593_v12 = vld [vmem:[#allocation2 + $0x31] sm:$0xff]  ;;  %v6682_v7 = vld [vmem:[%s7667_s3 + $0x28] sm:$0xff] }
  0xfd   : > { %739 = vst.msk [vmem:[#allocation2 + $0x61] sm:$0xff] %vm676_vm1, %v650_v8  ;;  %v526_v13 = vadd.f32 %v6561_v45, %v525_v11  ;;  %5541 = vmatprep.mubr.msk.f32.mxu0 %vm676_vm1, %v6593_v12 }
  0xfe   : > { %v653_v15 = vmax.f32 %v531_v10, 0.0  ;;  %5542 = vmatmul.mubr.msk.f32.gmra.mrb[36].mxu0 %vm676_vm1, %v6599_v14 }
  0xff   : > { %v652_v16 = vmax.f32 %v526_v13, 0.0  ;;  %v5502_v17 = vpop.f32.mrb[10].mxu0  ;;  %v6611_v22 = vld [vmem:[#allocation2 + $0x51] sm:$0xff] }
 0x100   : > { %742 = vst.msk [vmem:[#allocation2 + $0x81] sm:$0xff] %vm676_vm1, %v653_v15  ;;  %v541_v18 = vadd.f32 %v5502_v17, %v6561_v45  ;;  %v535_v19 = vpop.f32.mrb[11].mxu0  ;;  %v6605_v20 = vld [vmem:[#allocation2 + $0x49] sm:$0xff] }
 0x101   : > { %741 = vst.msk [vmem:[#allocation2 + $0x79] sm:$0xff] %vm676_vm1, %v652_v16  ;;  %v536_v21 = vadd.f32 %v6561_v45, %v535_v19  ;;  %5544 = vmatprep.mubr.msk.f32.mxu0 %vm676_vm1, %v6605_v20 }
 0x102   : > { %v655_v23 = vmax.f32 %v541_v18, 0.0  ;;  %5545 = vmatmul.mubr.msk.f32.gmra.mrb[38].mxu0 %vm676_vm1, %v6611_v22 }
 0x103   : > { %v654_v24 = vmax.f32 %v536_v21, 0.0  ;;  %v5505_v25 = vpop.f32.mrb[12].mxu0  ;;  %v6623_v30 = vld [vmem:[#allocation2 + $0x69] sm:$0xff] }
 0x104   : > { %744 = vst.msk [vmem:[#allocation2 + $0x99] sm:$0xff] %vm676_vm1, %v655_v23  ;;  %v551_v26 = vadd.f32 %v5505_v25, %v6561_v45  ;;  %v545_v27 = vpop.f32.mrb[13].mxu0  ;;  %v6617_v28 = vld [vmem:[#allocation2 + $0x61] sm:$0xff] }
 0x105   : > { %743 = vst.msk [vmem:[#allocation2 + $0x91] sm:$0xff] %vm676_vm1, %v654_v24  ;;  %v546_v29 = vadd.f32 %v6561_v45, %v545_v27  ;;  %5547 = vmatprep.mubr.msk.f32.mxu0 %vm676_vm1, %v6617_v28 }
 0x106   : > { %v657_v31 = vmax.f32 %v551_v26, 0.0  ;;  %5548 = vmatmul.mubr.msk.f32.gmra.mrb[40].mxu0 %vm676_vm1, %v6623_v30 }
 0x107   : > { %v656_v32 = vmax.f32 %v546_v29, 0.0  ;;  %v5508_v33 = vpop.f32.mrb[14].mxu0  ;;  %v6635_v38 = vld [vmem:[#allocation2 + $0x81] sm:$0xff] }
 0x108   : > { %746 = vst.msk [vmem:[#allocation2 + $0xb1] sm:$0xff] %vm676_vm1, %v657_v31  ;;  %v561_v34 = vadd.f32 %v5508_v33, %v6561_v45  ;;  %v555_v35 = vpop.f32.mrb[15].mxu0  ;;  %v6629_v36 = vld [vmem:[#allocation2 + $0x79] sm:$0xff] }
 0x109   : > { %745 = vst.msk [vmem:[#allocation2 + $0xa9] sm:$0xff] %vm676_vm1, %v656_v32  ;;  %v556_v37 = vadd.f32 %v6561_v45, %v555_v35  ;;  %5550 = vmatprep.mubr.msk.f32.mxu0 %vm676_vm1, %v6629_v36 }
 0x10a   : > { %v659_v39 = vmax.f32 %v561_v34, 0.0  ;;  %5551 = vmatmul.mubr.msk.f32.gmra.mrb[42].mxu0 %vm676_vm1, %v6635_v38 }
 0x10b   : > { %v658_v40 = vmax.f32 %v556_v37, 0.0  ;;  %v5511_v41 = vpop.f32.mrb[16].mxu0  ;;  %v6647_v49 = vld [vmem:[#allocation2 + $0x99] sm:$0xff] }
 0x10c   : > { %748 = vst.msk [vmem:[#allocation2 + $0xc9] sm:$0xff] %vm676_vm1, %v659_v39  ;;  %v571_v44 = vadd.f32 %v5511_v41, %v6561_v45  ;;  %v565_v46 = vpop.f32.mrb[17].mxu0  ;;  %v6641_v47 = vld [vmem:[#allocation2 + $0x91] sm:$0xff] }
 0x10d   : > { %747 = vst.msk [vmem:[#allocation2 + $0xc1] sm:$0xff] %vm676_vm1, %v658_v40  ;;  %v566_v48 = vadd.f32 %v6561_v45, %v565_v46  ;;  %5553 = vmatprep.mubr.msk.f32.mxu0 %vm676_vm1, %v6641_v47 }
 0x10e   : > { %v661_v50 = vmax.f32 %v571_v44, 0.0  ;;  %5554 = vmatmul.mubr.msk.f32.gmra.mrb[44].mxu0 %vm676_vm1, %v6647_v49 }
 0x10f   : > { %v660_v51 = vmax.f32 %v566_v48, 0.0  ;;  %v5514_v52 = vpop.f32.mrb[18].mxu0  ;;  %v6659_v57 = vld [vmem:[#allocation2 + $0xb1] sm:$0xff] }
 0x110   : > { %750 = vst.msk [vmem:[#allocation2 + $0xe1] sm:$0xff] %vm676_vm1, %v661_v50  ;;  %v581_v53 = vadd.f32 %v5514_v52, %v6561_v45  ;;  %v575_v54 = vpop.f32.mrb[19].mxu0  ;;  %v6653_v55 = vld [vmem:[#allocation2 + $0xa9] sm:$0xff] }
 0x111   : > { %749 = vst.msk [vmem:[#allocation2 + $0xd9] sm:$0xff] %vm676_vm1, %v660_v51  ;;  %v576_v56 = vadd.f32 %v6561_v45, %v575_v54  ;;  %5556 = vmatprep.mubr.msk.f32.mxu0 %vm676_vm1, %v6653_v55 }
 0x112   : > { %v663_v58 = vmax.f32 %v581_v53, 0.0  ;;  %5557 = vmatmul.mubr.msk.f32.gmra.mrb[46].mxu0 %vm676_vm1, %v6659_v57 }
 0x113   : > { %v662_v60 = vmax.f32 %v576_v56, 0.0  ;;  %v5517_v61 = vpop.f32.mrb[20].mxu0  ;;  %v6677_v5 = vld [vmem:[#allocation2 + $0xc9] sm:$0xff] }
 0x114   : > { %752 = vst.msk [vmem:[#allocation2 + $0xf9] sm:$0xff] %vm676_vm1, %v663_v58  ;;  %v591_v62 = vadd.f32 %v5517_v61, %v6561_v45  ;;  %v585_v63 = vpop.f32.mrb[21].mxu0  ;;  %v6665_v0 = vld [vmem:[#allocation2 + $0xc1] sm:$0xff] }
 0x115   : > { %v6667_v1 = vld [vmem:[#allocation2 + $0xc0] sm:$0xff]  ;;  %v6669_v2 = vld [vmem:[#allocation2 + $0xc8] sm:$0xff]  ;;  %751 = vst.msk [vmem:[#allocation2 + $0xf1] sm:$0xff] %vm676_vm1, %v662_v60  ;;  %v586_v3 = vadd.f32 %v6561_v45, %v585_v63  ;;  %5559 = vmatprep.mubr.msk.f32.mxu0 %vm676_vm1, %v6665_v0 }
 0x116   : > { %5706 = vmatprep.mubr.msk.f32.mxu1 %vm676_vm1, %v6667_v1  ;;  %v665_v8 = vmax.f32 %v591_v62, 0.0  ;;  %5560 = vmatmul.mubr.msk.f32.gmra.mrb[48].mxu0 %vm676_vm1, %v6677_v5 }
 0x117   : > { %5707 = vmatmul.mubr.msk.f32.vlgmr.msra.gmra.mrb[0].mxu1 %vm676_vm1, %v6669_v2  ;;  %v664_v9 = vmax.f32 %v586_v3, 0.0  ;;  %v5520_v10 = vpop.f32.mrb[22].mxu0 }
 0x118   : > { %5734 = vmatpush3.msra.mxu1 %v6552_v43  ;;  %754 = vst.msk [vmem:[#allocation2 + $0x111] sm:$0xff] %vm676_vm1, %v665_v8  ;;  %v601_v11 = vadd.f32 %v5520_v10, %v6561_v45  ;;  %v595_v13 = vpop.f32.mrb[23].mxu0  ;;  %v6691_v15 = vld [vmem:[#allocation2 + $0xd9] sm:$0xff]  ;;  %v6704_v43 = vld [vmem:[#allocation2 + $0xe1] sm:$0xff] }
 0x119   : > { %v6693_v16 = vld [vmem:[#allocation2 + $0xd8] sm:$0xff]  ;;  %v6695_v17 = vld [vmem:[#allocation2 + $0xe0] sm:$0xff]  ;;  %5783 = vmatprep.subr.mxu1 %v6682_v7  ;;  %753 = vst.msk [vmem:[#allocation2 + $0x109] sm:$0xff] %vm676_vm1, %v664_v9  ;;  %v596_v18 = vadd.f32 %v6561_v45, %v595_v13  ;;  %5562 = vmatprep.mubr.msk.f32.mxu0 %vm676_vm1, %v6691_v15 }
 0x11a   : > { %5709 = vmatprep.mubr.msk.f32.mxu1 %vm676_vm1, %v6693_v16  ;;  %v667_v19 = vmax.f32 %v601_v11, 0.0  ;;  %5563 = vmatmul.mubr.msk.f32.gmra.mrb[50].mxu0 %vm676_vm1, %v6704_v43 }
 0x11b   : > { %5710 = vmatmul.mubr.msk.f32.gmra.mrb[2].mxu1 %vm676_vm1, %v6695_v17  ;;  %v666_v21 = vmax.f32 %v596_v18, 0.0  ;;  %v5523_v23 = vpop.f32.mrb[24].mxu0  ;;  %v6724_v32 = vld [vmem:[#allocation2 + $0xf9] sm:$0xff] }
 0x11c   : > { %756 = vst.msk [vmem:[#allocation2 + $0x129] sm:$0xff] %vm676_vm1, %v667_v19  ;;  %v611_v24 = vadd.f32 %v5523_v23, %v6561_v45  ;;  %v605_v25 = vpop.f32.mrb[25].mxu0  ;;  %v6712_v26 = vld [vmem:[#allocation2 + $0xf1] sm:$0xff] }
 0x11d   : > { %v6714_v27 = vld [vmem:[#allocation2 + $0xf0] sm:$0xff]  ;;  %v6716_v29 = vld [vmem:[#allocation2 + $0xf8] sm:$0xff]  ;;  %755 = vst.msk [vmem:[#allocation2 + $0x121] sm:$0xff] %vm676_vm1, %v666_v21  ;;  %v606_v31 = vadd.f32 %v6561_v45, %v605_v25  ;;  %5565 = vmatprep.mubr.msk.f32.mxu0 %vm676_vm1, %v6712_v26 }
 0x11e   : > { %5712 = vmatprep.mubr.msk.f32.mxu1 %vm676_vm1, %v6714_v27  ;;  %v669_v33 = vmax.f32 %v611_v24, 0.0  ;;  %5566 = vmatmul.mubr.msk.f32.gmra.mrb[52].mxu0 %vm676_vm1, %v6724_v32 }
 0x11f   : > { %5713 = vmatmul.mubr.msk.f32.gmra.mrb[4].mxu1 %vm676_vm1, %v6716_v29  ;;  %v668_v34 = vmax.f32 %v606_v31, 0.0  ;;  %v5526_v35 = vpop.f32.mrb[26].mxu0  ;;  %v6744_v48 = vld [vmem:[#allocation2 + $0x111] sm:$0xff] }
 0x120   : > { %758 = vst.msk [vmem:[#allocation2 + $0x141] sm:$0xff] %vm676_vm1, %v669_v33  ;;  %v621_v37 = vadd.f32 %v5526_v35, %v6561_v45  ;;  %v615_v39 = vpop.f32.mrb[27].mxu0  ;;  %v6732_v40 = vld [vmem:[#allocation2 + $0x109] sm:$0xff] }
 0x121   : > { %v6734_v41 = vld [vmem:[#allocation2 + $0x108] sm:$0xff]  ;;  %v6736_v44 = vld [vmem:[#allocation2 + $0x110] sm:$0xff]  ;;  %757 = vst.msk [vmem:[#allocation2 + $0x139] sm:$0xff] %vm676_vm1, %v668_v34  ;;  %v616_v46 = vadd.f32 %v6561_v45, %v615_v39  ;;  %5568 = vmatprep.mubr.msk.f32.mxu0 %vm676_vm1, %v6732_v40  ;;  %v765_v34 = vld [vmem:[#allocation2] sm:$0xff] }
 0x122   : > { %5715 = vmatprep.mubr.msk.f32.mxu1 %vm676_vm1, %v6734_v41  ;;  %v671_v50 = vmax.f32 %v621_v37, 0.0  ;;  %5569 = vmatmul.mubr.msk.f32.gmra.mrb[54].mxu0 %vm676_vm1, %v6744_v48 }
 0x123   : > { %5716 = vmatmul.mubr.msk.f32.gmra.mrb[6].mxu1 %vm676_vm1, %v6736_v44  ;;  %v670_v51 = vmax.f32 %v616_v46, 0.0  ;;  %v5529_v52 = vpop.f32.mrb[28].mxu0  ;;  %v6764_v62 = vld [vmem:[#allocation2 + $0x129] sm:$0xff] }
 0x124   : > { %760 = vst.msk [vmem:[#allocation2 + $0x159] sm:$0xff] %vm676_vm1, %v671_v50  ;;  %v631_v53 = vadd.f32 %v5529_v52, %v6561_v45  ;;  %v625_v54 = vpop.f32.mrb[29].mxu0  ;;  %v6752_v56 = vld [vmem:[#allocation2 + $0x121] sm:$0xff] }
 0x125   : > { %v6754_v58 = vld [vmem:[#allocation2 + $0x120] sm:$0xff]  ;;  %v6756_v60 = vld [vmem:[#allocation2 + $0x128] sm:$0xff]  ;;  %759 = vst.msk [vmem:[#allocation2 + $0x151] sm:$0xff] %vm676_vm1, %v670_v51  ;;  %v626_v61 = vadd.f32 %v6561_v45, %v625_v54  ;;  %5571 = vmatprep.mubr.msk.f32.mxu0 %vm676_vm1, %v6752_v56 }
 0x126   : > { %5718 = vmatprep.mubr.msk.f32.mxu1 %vm676_vm1, %v6754_v58  ;;  %v673_v63 = vmax.f32 %v631_v53, 0.0  ;;  %5572 = vmatmul.mubr.msk.f32.gmra.mrb[56].mxu0 %vm676_vm1, %v6764_v62  ;;  %v766_v50 = vld [vmem:[#allocation2 + $0x8] sm:$0xff]  ;;  %v6834_v53 = vld [vmem:[#allocation2 + $0x18] sm:$0xff]  ;;  %v6841_v54 = vld [vmem:[#allocation2 + $0x20] sm:$0xff] }
 0x127   : > { %5719 = vmatmul.mubr.msk.f32.gmra.mrb[8].mxu1 %vm676_vm1, %v6756_v60  ;;  %v672_v3 = vmax.f32 %v626_v61, 0.0  ;;  %v5532_v8 = vpop.f32.mrb[30].mxu0  ;;  %v6784_v21 = vld [vmem:[#allocation2 + $0x141] sm:$0xff]  ;;  %v6846_v61 = vld [vmem:[%s7667_s3 + $0x30] sm:$0xff] }
 0x128   : > { %762 = vst.msk [vmem:[#allocation2 + $0x171] sm:$0xff] %vm676_vm1, %v673_v63  ;;  %v641_v9 = vadd.f32 %v5532_v8, %v6561_v45  ;;  %v635_v10 = vpop.f32.mrb[31].mxu0  ;;  %v6772_v11 = vld [vmem:[#allocation2 + $0x139] sm:$0xff]  ;;  %v6853_v63 = vld [vmem:[#allocation2 + $0x30] sm:$0xff] }
 0x129   : > { %v6774_v13 = vld [vmem:[#allocation2 + $0x138] sm:$0xff]  ;;  %v6776_v18 = vld [vmem:[#allocation2 + $0x140] sm:$0xff]  ;;  %761 = vst.msk [vmem:[#allocation2 + $0x169] sm:$0xff] %vm676_vm1, %v672_v3  ;;  %v636_v19 = vadd.f32 %v6561_v45, %v635_v10  ;;  %5574 = vmatprep.mubr.msk.f32.mxu0 %vm676_vm1, %v6772_v11  ;;  %v7025_v10 = vld [vmem:[#allocation2 + $0x4a] sm:$0xff] }
 0x12a   : > { %5721 = vmatprep.mubr.msk.f32.mxu1 %vm676_vm1, %v6774_v13  ;;  %v675_v23 = vmax.f32 %v641_v9, 0.0  ;;  %5575 = vmatmul.mubr.msk.f32.gmra.mrb[58].mxu0 %vm676_vm1, %v6784_v21  ;;  %v1477_v3 = vld [vmem:[#allocation2 + $0x22] sm:$0xff]  ;;  %v7007_v8 = vld [vmem:[%s7667_s3 + $0x38] sm:$0xff] }
 0x12b   : > { %5722 = vmatmul.mubr.msk.f32.gmra.mrb[10].mxu1 %vm676_vm1, %v6776_v18  ;;  %v674_v24 = vmax.f32 %v636_v19, 0.0  ;;  %v6802_v33 = vld [vmem:[#allocation2 + $0x159] sm:$0xff] }
 0x12c   : > { %764 = vst.msk [vmem:[#allocation2 + $0x189] sm:$0xff] %vm676_vm1, %v675_v23  ;;  %v6791_v25 = vld [vmem:[#allocation2 + $0x151] sm:$0xff]  ;;  %v7037_v23 = vld [vmem:[#allocation2 + $0x62] sm:$0xff] }
 0x12d   : > { %v6793_v45 = vld [vmem:[#allocation2 + $0x150] sm:$0xff]  ;;  %v6795_v31 = vld [vmem:[#allocation2 + $0x158] sm:$0xff]  ;;  %763 = vst.msk [vmem:[#allocation2 + $0x181] sm:$0xff] %vm676_vm1, %v674_v24  ;;  %5577 = vmatprep.mubr.msk.f32.mxu0 %vm676_vm1, %v6791_v25 }
 0x12e   : > { %5724 = vmatprep.mubr.msk.f32.mxu1 %vm676_vm1, %v6793_v45  ;;  %5578 = vmatmul.mubr.msk.f32.gmra.mrb[60].mxu0 %vm676_vm1, %v6802_v33  ;;  %v7011_v9 = vld [vmem:[#allocation2 + $0x32] sm:$0xff]  ;;  %v7043_v24 = vld [vmem:[#allocation2 + $0x6a] sm:$0xff] }
 0x12f   : > { %5725 = vmatmul.mubr.msk.f32.gmra.mrb[12].mxu1 %vm676_vm1, %v6795_v31  ;;  %v6818_v46 = vld [vmem:[#allocation2 + $0x171] sm:$0xff] }
 0x130   : > { %v6808_v35 = vld [vmem:[#allocation2 + $0x169] sm:$0xff]  ;;  %v7031_v19 = vld [vmem:[#allocation2 + $0x52] sm:$0xff] }
 0x131   : > { %v6810_v37 = vld [vmem:[#allocation2 + $0x168] sm:$0xff]  ;;  %v6812_v39 = vld [vmem:[#allocation2 + $0x170] sm:$0xff]  ;;  %5580 = vmatprep.mubr.msk.f32.mxu0 %vm676_vm1, %v6808_v35 }
 0x132   : > { %5727 = vmatprep.mubr.msk.f32.mxu1 %vm676_vm1, %v6810_v37  ;;  %5581 = vmatmul.mubr.msk.f32.gmra.mrb[62].mxu0 %vm676_vm1, %v6818_v46 }
 0x133   : > { %5728 = vmatmul.mubr.msk.f32.gmra.mrb[14].mxu1 %vm676_vm1, %v6812_v39  ;;  %5585 = vmatprep.mubr.msk.f32.mxu0 %vm676_vm1, %v765_v34  ;;  %v7049_v34 = vld [vmem:[#allocation2 + $0x7a] sm:$0xff] }
 0x134   : > { %v6825_v51 = vld [vmem:[#allocation2 + $0x180] sm:$0xff]  ;;  %v6827_v52 = vld [vmem:[#allocation2 + $0x188] sm:$0xff] }
 0x135   : > { %5730 = vmatprep.mubr.msk.f32.mxu1 %vm676_vm1, %v6825_v51 }
 0x136   : > { %5586 = vmatmul.mubr.msk.f32.vlgmr.msra.gmra.mrb[32].mxu0 %vm676_vm1, %v766_v50  ;;  %v7055_v50 = vld [vmem:[#allocation2 + $0x82] sm:$0xff] }
 0x137   : > { %5731 = vmatmul.mubr.msk.f32.gmra.mrb[16].mxu1 %vm676_vm1, %v6827_v52  ;;  %5588 = vmatprep.mubr.msk.f32.mxu0 %vm676_vm1, %v6834_v53 }
 0x138   : > { %5735 = vmatprep.mubr.msk.f32.mxu1 %vm676_vm1, %v6581_v4  ;;  %5634 = vmatpush3.msra.mxu0 %v6572_v59  ;;  %v6861_v59 = vld [vmem:[#allocation2 + $0x38] sm:$0xff]  ;;  %v6867_v4 = vld [vmem:[#allocation2 + $0x48] sm:$0xff] }
 0x139   : > { %5683 = vmatprep.subr.mxu0 %v6545_v42 }
 0x13a   : > { %5589 = vmatmul.mubr.msk.f32.gmra.mrb[34].mxu0 %vm676_vm1, %v6841_v54 }
 0x13b   : > { %5736 = vmatmul.mubr.msk.f32.vlgmr.msra.gmra.mrb[18].mxu1 %vm676_vm1, %v6587_v6  ;;  %5591 = vmatprep.mubr.msk.f32.mxu0 %vm676_vm1, %v6853_v63  ;;  %v6873_v6 = vld [vmem:[#allocation2 + $0x50] sm:$0xff] }
 0x13c   : > { %5784 = vmatpush3.msra.mxu1 %v6682_v7  ;;  %5738 = vmatprep.mubr.msk.f32.mxu1 %vm676_vm1, %v6593_v12  ;;  %v6879_v12 = vld [vmem:[#allocation2 + $0x60] sm:$0xff] }
 0x13d   : > { %5833 = vmatprep.subr.mxu1 %v6846_v61  ;;  %v1476_v7 = vld [vmem:[#allocation2 + $0x1a] sm:$0xff] }
 0x13e   : > { %5592 = vmatmul.mubr.msk.f32.gmra.mrb[36].mxu0 %vm676_vm1, %v6861_v59 }
 0x13f   : > { %5739 = vmatmul.mubr.msk.f32.gmra.mrb[20].mxu1 %vm676_vm1, %v6599_v14  ;;  %5594 = vmatprep.mubr.msk.f32.mxu0 %vm676_vm1, %v6867_v4  ;;  %v6885_v14 = vld [vmem:[#allocation2 + $0x68] sm:$0xff] }
 0x140   : > { %5741 = vmatprep.mubr.msk.f32.mxu1 %vm676_vm1, %v6605_v20  ;;  %v6891_v20 = vld [vmem:[#allocation2 + $0x78] sm:$0xff] }
 0x142   : > { %5595 = vmatmul.mubr.msk.f32.gmra.mrb[38].mxu0 %vm676_vm1, %v6873_v6 }
 0x143   : > { %5742 = vmatmul.mubr.msk.f32.gmra.mrb[22].mxu1 %vm676_vm1, %v6611_v22  ;;  %5597 = vmatprep.mubr.msk.f32.mxu0 %vm676_vm1, %v6879_v12  ;;  %v6897_v22 = vld [vmem:[#allocation2 + $0x80] sm:$0xff] }
 0x144   : > { %5744 = vmatprep.mubr.msk.f32.mxu1 %vm676_vm1, %v6617_v28  ;;  %v6903_v28 = vld [vmem:[#allocation2 + $0x90] sm:$0xff] }
 0x146   : > { %5598 = vmatmul.mubr.msk.f32.gmra.mrb[40].mxu0 %vm676_vm1, %v6885_v14 }
 0x147   : > { %5745 = vmatmul.mubr.msk.f32.gmra.mrb[24].mxu1 %vm676_vm1, %v6623_v30  ;;  %5600 = vmatprep.mubr.msk.f32.mxu0 %vm676_vm1, %v6891_v20  ;;  %v6909_v30 = vld [vmem:[#allocation2 + $0x98] sm:$0xff] }
 0x148   : > { %5747 = vmatprep.mubr.msk.f32.mxu1 %vm676_vm1, %v6629_v36  ;;  %v6915_v36 = vld [vmem:[#allocation2 + $0xa8] sm:$0xff] }
 0x14a   : > { %5601 = vmatmul.mubr.msk.f32.gmra.mrb[42].mxu0 %vm676_vm1, %v6897_v22 }
 0x14b   : > { %5748 = vmatmul.mubr.msk.f32.gmra.mrb[26].mxu1 %vm676_vm1, %v6635_v38  ;;  %5603 = vmatprep.mubr.msk.f32.mxu0 %vm676_vm1, %v6903_v28  ;;  %v6921_v38 = vld [vmem:[#allocation2 + $0xb0] sm:$0xff] }
 0x14c   : > { %5750 = vmatprep.mubr.msk.f32.mxu1 %vm676_vm1, %v6641_v47  ;;  %v1474_v47 = vld [vmem:[#allocation2 + $0x2] sm:$0xff] }
 0x14e   : > { %5604 = vmatmul.mubr.msk.f32.gmra.mrb[44].mxu0 %vm676_vm1, %v6909_v30 }
 0x14f   : > { %5751 = vmatmul.mubr.msk.f32.gmra.mrb[28].mxu1 %vm676_vm1, %v6647_v49  ;;  %5606 = vmatprep.mubr.msk.f32.mxu0 %vm676_vm1, %v6915_v36  ;;  %v6991_v49 = vld [vmem:[#allocation2 + $0x181] sm:$0xff] }
 0x150   : > { %5753 = vmatprep.mubr.msk.f32.mxu1 %vm676_vm1, %v6653_v55  ;;  %v1475_v55 = vld [vmem:[#allocation2 + $0xa] sm:$0xff] }
 0x152   : > { %5607 = vmatmul.mubr.msk.f32.gmra.mrb[46].mxu0 %vm676_vm1, %v6921_v38 }
 0x153   : > { %5754 = vmatmul.mubr.msk.f32.gmra.mrb[30].mxu1 %vm676_vm1, %v6659_v57  ;;  %5609 = vmatprep.mubr.msk.f32.mxu0 %vm676_vm1, %v6667_v1  ;;  %v6996_v57 = vld [vmem:[#allocation2 + $0x189] sm:$0xff] }
 0x154   : > { %5756 = vmatprep.mubr.msk.f32.mxu1 %vm676_vm1, %v6665_v0 }
 0x156   : > { %5610 = vmatmul.mubr.msk.f32.gmra.mrb[48].mxu0 %vm676_vm1, %v6669_v2 }
 0x157   : > { %5757 = vmatmul.mubr.msk.f32.gmra.mrb[0].mxu1 %vm676_vm1, %v6677_v5  ;;  %5612 = vmatprep.mubr.msk.f32.mxu0 %vm676_vm1, %v6693_v16 }
 0x158   : > { %5759 = vmatprep.mubr.msk.f32.mxu1 %vm676_vm1, %v6691_v15 }
 0x15a   : > { %5613 = vmatmul.mubr.msk.f32.gmra.mrb[50].mxu0 %vm676_vm1, %v6695_v17 }
 0x15b   : > { %5760 = vmatmul.mubr.msk.f32.gmra.mrb[2].mxu1 %vm676_vm1, %v6704_v43  ;;  %5615 = vmatprep.mubr.msk.f32.mxu0 %vm676_vm1, %v6714_v27 }
 0x15c   : > { %5762 = vmatprep.mubr.msk.f32.mxu1 %vm676_vm1, %v6712_v26 }
 0x15e   : > { %5616 = vmatmul.mubr.msk.f32.gmra.mrb[52].mxu0 %vm676_vm1, %v6716_v29 }
 0x15f   : > { %5763 = vmatmul.mubr.msk.f32.gmra.mrb[4].mxu1 %vm676_vm1, %v6724_v32  ;;  %5618 = vmatprep.mubr.msk.f32.mxu0 %vm676_vm1, %v6734_v41 }
 0x160   : > { %5765 = vmatprep.mubr.msk.f32.mxu1 %vm676_vm1, %v6732_v40 }
 0x162   : > { %5619 = vmatmul.mubr.msk.f32.gmra.mrb[54].mxu0 %vm676_vm1, %v6736_v44 }
 0x163   : > { %5766 = vmatmul.mubr.msk.f32.gmra.mrb[6].mxu1 %vm676_vm1, %v6744_v48  ;;  %5621 = vmatprep.mubr.msk.f32.mxu0 %vm676_vm1, %v6754_v58 }
 0x164   : > { %5768 = vmatprep.mubr.msk.f32.mxu1 %vm676_vm1, %v6752_v56 }
 0x166   : > { %5622 = vmatmul.mubr.msk.f32.gmra.mrb[56].mxu0 %vm676_vm1, %v6756_v60 }
 0x167   : > { %5769 = vmatmul.mubr.msk.f32.gmra.mrb[8].mxu1 %vm676_vm1, %v6764_v62  ;;  %5624 = vmatprep.mubr.msk.f32.mxu0 %vm676_vm1, %v6774_v13 }
 0x168   : > { %5771 = vmatprep.mubr.msk.f32.mxu1 %vm676_vm1, %v6772_v11 }
 0x16a   : > { %5625 = vmatmul.mubr.msk.f32.gmra.mrb[58].mxu0 %vm676_vm1, %v6776_v18 }
 0x16b   : > { %5772 = vmatmul.mubr.msk.f32.gmra.mrb[10].mxu1 %vm676_vm1, %v6784_v21  ;;  %5627 = vmatprep.mubr.msk.f32.mxu0 %vm676_vm1, %v6793_v45 }
 0x16c   : > { %5774 = vmatprep.mubr.msk.f32.mxu1 %vm676_vm1, %v6791_v25 }
 0x16e   : > { %5628 = vmatmul.mubr.msk.f32.gmra.mrb[60].mxu0 %vm676_vm1, %v6795_v31 }
 0x16f   : > { %5775 = vmatmul.mubr.msk.f32.gmra.mrb[12].mxu1 %vm676_vm1, %v6802_v33  ;;  %5630 = vmatprep.mubr.msk.f32.mxu0 %vm676_vm1, %v6810_v37 }
 0x170   : > { %5777 = vmatprep.mubr.msk.f32.mxu1 %vm676_vm1, %v6808_v35 }
 0x172   : > { %5631 = vmatmul.mubr.msk.f32.gmra.mrb[62].mxu0 %vm676_vm1, %v6812_v39 }
 0x173   : > { %5778 = vmatmul.mubr.msk.f32.gmra.mrb[14].mxu1 %vm676_vm1, %v6818_v46  ;;  %5635 = vmatprep.mubr.msk.f32.mxu0 %vm676_vm1, %v1474_v47  ;;  %v7067_v47 = vld [vmem:[#allocation2 + $0x9a] sm:$0xff] }
 0x174   : > { %5780 = vmatprep.mubr.msk.f32.mxu1 %vm676_vm1, %v6991_v49  ;;  %7689 = vst [vmem:[#allocation3_spill] sm:$0xff] %v7067_v47 }
 0x176   : > { %5636 = vmatmul.mubr.msk.f32.vlgmr.msra.gmra.mrb[32].mxu0 %vm676_vm1, %v1475_v55  ;;  %v7073_v55 = vld [vmem:[#allocation2 + $0xaa] sm:$0xff] }
 0x177   : > { %5781 = vmatmul.mubr.msk.f32.gmra.mrb[16].mxu1 %vm676_vm1, %v6996_v57  ;;  %5638 = vmatprep.mubr.msk.f32.mxu0 %vm676_vm1, %v1476_v7  ;;  %7690 = vst [vmem:[#allocation4_spill] sm:$0xff] %v7073_v55 }
 0x178   : > { %5785 = vmatprep.mubr.msk.f32.mxu1 %vm676_vm1, %v1476_v7  ;;  %5684 = vmatpush3.msra.mxu0 %v6545_v42  ;;  %v7019_v42 = vld [vmem:[#allocation2 + $0x3a] sm:$0xff]  ;;  %v7079_v7 = vld [vmem:[#allocation2 + $0xb2] sm:$0xff] }
 0x179   : > { %7691 = vst [vmem:[#allocation5_spill] sm:$0xff] %v7079_v7 }
 0x17a   : > { %5639 = vmatmul.mubr.msk.f32.gmra.mrb[34].mxu0 %vm676_vm1, %v1477_v3 }
 0x17b   : > { %5786 = vmatmul.mubr.msk.f32.vlgmr.msra.gmra.mrb[18].mxu1 %vm676_vm1, %v1477_v3  ;;  %5641 = vmatprep.mubr.msk.f32.mxu0 %vm676_vm1, %v7011_v9  ;;  %v7085_v3 = vld [vmem:[#allocation2 + $0xc2] sm:$0xff] }
 0x17c   : > { %5834 = vmatpush3.msra.mxu1 %v6846_v61  ;;  %5788 = vmatprep.mubr.msk.f32.mxu1 %vm676_vm1, %v7011_v9  ;;  %v7061_v61 = vld [vmem:[#allocation2 + $0x92] sm:$0xff]  ;;  %7692 = vst [vmem:[#allocation6_spill] sm:$0xff] %v7085_v3 }
 0x17d   : > { %5883 = vmatprep.subr.mxu1 %v7007_v8 }
 0x17e   : > { %5642 = vmatmul.mubr.msk.f32.gmra.mrb[36].mxu0 %vm676_vm1, %v7019_v42 }
 0x17f   : > { %5789 = vmatmul.mubr.msk.f32.gmra.mrb[20].mxu1 %vm676_vm1, %v7019_v42  ;;  %5644 = vmatprep.mubr.msk.f32.mxu0 %vm676_vm1, %v7025_v10 }
 0x180   : > { %5791 = vmatprep.mubr.msk.f32.mxu1 %vm676_vm1, %v7025_v10 }
 0x182   : > { %5645 = vmatmul.mubr.msk.f32.gmra.mrb[38].mxu0 %vm676_vm1, %v7031_v19 }
 0x183   : > { %5792 = vmatmul.mubr.msk.f32.gmra.mrb[22].mxu1 %vm676_vm1, %v7031_v19  ;;  %5647 = vmatprep.mubr.msk.f32.mxu0 %vm676_vm1, %v7037_v23 }
 0x184   : > { %5794 = vmatprep.mubr.msk.f32.mxu1 %vm676_vm1, %v7037_v23 }
 0x186   : > { %5648 = vmatmul.mubr.msk.f32.gmra.mrb[40].mxu0 %vm676_vm1, %v7043_v24 }
 0x187   : > { %5795 = vmatmul.mubr.msk.f32.gmra.mrb[24].mxu1 %vm676_vm1, %v7043_v24  ;;  %5650 = vmatprep.mubr.msk.f32.mxu0 %vm676_vm1, %v7049_v34 }
 0x188   : > { %5797 = vmatprep.mubr.msk.f32.mxu1 %vm676_vm1, %v7049_v34 }
 0x18a   : > { %5651 = vmatmul.mubr.msk.f32.gmra.mrb[42].mxu0 %vm676_vm1, %v7055_v50 }
 0x18b   : > { %5798 = vmatmul.mubr.msk.f32.gmra.mrb[26].mxu1 %vm676_vm1, %v7055_v50  ;;  %5653 = vmatprep.mubr.msk.f32.mxu0 %vm676_vm1, %v7061_v61 }
 0x18c   : > { %5800 = vmatprep.mubr.msk.f32.mxu1 %vm676_vm1, %v7061_v61 }
 0x18e   : > { %5654 = vmatmul.mubr.msk.f32.gmra.mrb[44].mxu0 %vm676_vm1, %v7067_v47 }
 0x18f   : > { %5801 = vmatmul.mubr.msk.f32.gmra.mrb[28].mxu1 %vm676_vm1, %v7067_v47  ;;  %5656 = vmatprep.mubr.msk.f32.mxu0 %vm676_vm1, %v7073_v55  ;;  %v7091_v47 = vld [vmem:[#allocation2 + $0xca] sm:$0xff] }
 0x190   : > { %5803 = vmatprep.mubr.msk.f32.mxu1 %vm676_vm1, %v7073_v55  ;;  %7693 = vst [vmem:[#allocation7_spill] sm:$0xff] %v7091_v47  ;;  %v7097_v55 = vld [vmem:[#allocation2 + $0xda] sm:$0xff] }
 0x191   : > { %7694 = vst [vmem:[#allocation8_spill] sm:$0xff] %v7097_v55 }
 0x192   : > { %5657 = vmatmul.mubr.msk.f32.gmra.mrb[46].mxu0 %vm676_vm1, %v7079_v7 }
 0x193   : > { %5804 = vmatmul.mubr.msk.f32.gmra.mrb[30].mxu1 %vm676_vm1, %v7079_v7  ;;  %5659 = vmatprep.mubr.msk.f32.mxu0 %vm676_vm1, %v7085_v3  ;;  %v7103_v7 = vld [vmem:[#allocation2 + $0xe2] sm:$0xff] }
 0x194   : > { %5806 = vmatprep.mubr.msk.f32.mxu1 %vm676_vm1, %v7085_v3  ;;  %7695 = vst [vmem:[#allocation9_spill] sm:$0xff] %v7103_v7  ;;  %v7109_v3 = vld [vmem:[#allocation2 + $0xf2] sm:$0xff] }
 0x195   : > { %7696 = vst [vmem:[#allocation10_spill] sm:$0xff] %v7109_v3 }
 0x196   : > { %5660 = vmatmul.mubr.msk.f32.gmra.mrb[48].mxu0 %vm676_vm1, %v7091_v47 }
 0x197   : > { %5807 = vmatmul.mubr.msk.f32.gmra.mrb[0].mxu1 %vm676_vm1, %v7091_v47  ;;  %5662 = vmatprep.mubr.msk.f32.mxu0 %vm676_vm1, %v7097_v55  ;;  %v7115_v47 = vld [vmem:[#allocation2 + $0xfa] sm:$0xff] }
 0x198   : > { %5809 = vmatprep.mubr.msk.f32.mxu1 %vm676_vm1, %v7097_v55  ;;  %7697 = vst [vmem:[#allocation11_spill] sm:$0xff] %v7115_v47  ;;  %v7121_v55 = vld [vmem:[#allocation2 + $0x10a] sm:$0xff] }
 0x199   : > { %7698 = vst [vmem:[#allocation12_spill] sm:$0xff] %v7121_v55 }
 0x19a   : > { %5663 = vmatmul.mubr.msk.f32.gmra.mrb[50].mxu0 %vm676_vm1, %v7103_v7 }
 0x19b   : > { %5810 = vmatmul.mubr.msk.f32.gmra.mrb[2].mxu1 %vm676_vm1, %v7103_v7  ;;  %5665 = vmatprep.mubr.msk.f32.mxu0 %vm676_vm1, %v7109_v3  ;;  %v7127_v7 = vld [vmem:[#allocation2 + $0x112] sm:$0xff] }
 0x19c   : > { %5812 = vmatprep.mubr.msk.f32.mxu1 %vm676_vm1, %v7109_v3  ;;  %7699 = vst [vmem:[#allocation13_spill] sm:$0xff] %v7127_v7  ;;  %v7133_v3 = vld [vmem:[#allocation2 + $0x122] sm:$0xff] }
 0x19d   : > { %7700 = vst [vmem:[#allocation14_spill] sm:$0xff] %v7133_v3 }
 0x19e   : > { %5666 = vmatmul.mubr.msk.f32.gmra.mrb[52].mxu0 %vm676_vm1, %v7115_v47 }
 0x19f   : > { %5813 = vmatmul.mubr.msk.f32.gmra.mrb[4].mxu1 %vm676_vm1, %v7115_v47  ;;  %5668 = vmatprep.mubr.msk.f32.mxu0 %vm676_vm1, %v7121_v55  ;;  %v7139_v47 = vld [vmem:[#allocation2 + $0x12a] sm:$0xff] }
 0x1a0   : > { %5815 = vmatprep.mubr.msk.f32.mxu1 %vm676_vm1, %v7121_v55  ;;  %7701 = vst [vmem:[#allocation15_spill] sm:$0xff] %v7139_v47  ;;  %v7145_v55 = vld [vmem:[#allocation2 + $0x13a] sm:$0xff] }
 0x1a1   : > { %7702 = vst [vmem:[#allocation16_spill] sm:$0xff] %v7145_v55 }
 0x1a2   : > { %5669 = vmatmul.mubr.msk.f32.gmra.mrb[54].mxu0 %vm676_vm1, %v7127_v7 }
 0x1a3   : > { %5816 = vmatmul.mubr.msk.f32.gmra.mrb[6].mxu1 %vm676_vm1, %v7127_v7  ;;  %5671 = vmatprep.mubr.msk.f32.mxu0 %vm676_vm1, %v7133_v3  ;;  %v7151_v7 = vld [vmem:[#allocation2 + $0x142] sm:$0xff] }
 0x1a4   : > { %5818 = vmatprep.mubr.msk.f32.mxu1 %vm676_vm1, %v7133_v3  ;;  %7703 = vst [vmem:[#allocation17_spill] sm:$0xff] %v7151_v7  ;;  %v7157_v3 = vld [vmem:[#allocation2 + $0x152] sm:$0xff] }
 0x1a5   : > { %7704 = vst [vmem:[#allocation18_spill] sm:$0xff] %v7157_v3 }
 0x1a6   : > { %5672 = vmatmul.mubr.msk.f32.gmra.mrb[56].mxu0 %vm676_vm1, %v7139_v47 }
 0x1a7   : > { %5819 = vmatmul.mubr.msk.f32.gmra.mrb[8].mxu1 %vm676_vm1, %v7139_v47  ;;  %5674 = vmatprep.mubr.msk.f32.mxu0 %vm676_vm1, %v7145_v55  ;;  %v7163_v47 = vld [vmem:[#allocation2 + $0x15a] sm:$0xff] }
 0x1a8   : > { %5821 = vmatprep.mubr.msk.f32.mxu1 %vm676_vm1, %v7145_v55  ;;  %7705 = vst [vmem:[#allocation19_spill] sm:$0xff] %v7163_v47  ;;  %v7169_v55 = vld [vmem:[#allocation2 + $0x16a] sm:$0xff] }
 0x1aa   : > { %5675 = vmatmul.mubr.msk.f32.gmra.mrb[58].mxu0 %vm676_vm1, %v7151_v7 }
 0x1ab   : > { %5822 = vmatmul.mubr.msk.f32.gmra.mrb[10].mxu1 %vm676_vm1, %v7151_v7  ;;  %5677 = vmatprep.mubr.msk.f32.mxu0 %vm676_vm1, %v7157_v3  ;;  %v7175_v7 = vld [vmem:[#allocation2 + $0x172] sm:$0xff] }
 0x1ac   : > { %5824 = vmatprep.mubr.msk.f32.mxu1 %vm676_vm1, %v7157_v3  ;;  %v7181_v3 = vld [vmem:[#allocation2 + $0x182] sm:$0xff] }
 0x1ae   : > { %5678 = vmatmul.mubr.msk.f32.gmra.mrb[60].mxu0 %vm676_vm1, %v7163_v47 }
 0x1af   : > { %5825 = vmatmul.mubr.msk.f32.gmra.mrb[12].mxu1 %vm676_vm1, %v7163_v47  ;;  %5680 = vmatprep.mubr.msk.f32.mxu0 %vm676_vm1, %v7169_v55  ;;  %v7187_v47 = vld [vmem:[#allocation2 + $0x18a] sm:$0xff] }
 0x1b0   : > { %5827 = vmatprep.mubr.msk.f32.mxu1 %vm676_vm1, %v7169_v55 }
 0x1b2   : > { %5681 = vmatmul.mubr.msk.f32.gmra.mrb[62].mxu0 %vm676_vm1, %v7175_v7 }
 0x1b3   : > { %5828 = vmatmul.mubr.msk.f32.gmra.mrb[14].mxu1 %vm676_vm1, %v7175_v7  ;;  %5685 = vmatprep.mubr.msk.f32.mxu0 %vm676_vm1, %v6834_v53  ;;  %v5040_v53 = vld [vmem:[%s7667_s3 + $0x40] sm:$0xff] }
 0x1b4   : > { %5830 = vmatprep.mubr.msk.f32.mxu1 %vm676_vm1, %v7181_v3 }
 0x1b6   : > { %5686 = vmatmul.mubr.msk.f32.vlgmr.msra.gmra.mrb[32].mxu0 %vm676_vm1, %v6841_v54  ;;  %v7721_v54 = vld [vmem:[#allocation18_spill] sm:$0xff] }
 0x1b7   : > { %5831 = vmatmul.mubr.msk.f32.gmra.mrb[16].mxu1 %vm676_vm1, %v7187_v47  ;;  %5688 = vmatprep.mubr.msk.f32.mxu0 %vm676_vm1, %v6853_v63 }
 0x1b8   : > { %5835 = vmatprep.mubr.msk.f32.mxu1 %vm676_vm1, %v6853_v63 }
 0x1ba   : > { %5689 = vmatmul.mubr.msk.f32.gmra.mrb[34].mxu0 %vm676_vm1, %v6861_v59 }
 0x1bb   : > { %5836 = vmatmul.mubr.msk.f32.vlgmr.msra.gmra.mrb[18].mxu1 %vm676_vm1, %v6861_v59  ;;  %5691 = vmatprep.mubr.msk.f32.mxu0 %vm676_vm1, %v6867_v4 }
 0x1bc   : > { %5884 = vmatpush3.msra.mxu1 %v7007_v8  ;;  %5838 = vmatprep.mubr.msk.f32.mxu1 %vm676_vm1, %v6867_v4  ;;  %v7722_v4 = vld [vmem:[#allocation19_spill] sm:$0xff] }
 0x1bd   : > { %5933 = vmatprep.subr.mxu1 %v5040_v53 }
 0x1be   : > { %5692 = vmatmul.mubr.msk.f32.gmra.mrb[36].mxu0 %vm676_vm1, %v6873_v6 }
 0x1bf   : > { %5839 = vmatmul.mubr.msk.f32.gmra.mrb[20].mxu1 %vm676_vm1, %v6873_v6  ;;  %5694 = vmatprep.mubr.msk.f32.mxu0 %vm676_vm1, %v6879_v12 }
 0x1c0   : > { %5841 = vmatprep.mubr.msk.f32.mxu1 %vm676_vm1, %v6879_v12 }
 0x1c2   : > { %5695 = vmatmul.mubr.msk.f32.gmra.mrb[38].mxu0 %vm676_vm1, %v6885_v14 }
 0x1c3   : > { %5842 = vmatmul.mubr.msk.f32.gmra.mrb[22].mxu1 %vm676_vm1, %v6885_v14  ;;  %5697 = vmatprep.mubr.msk.f32.mxu0 %vm676_vm1, %v6891_v20  ;;  %v3827_v14 = vld [vmem:[#allocation2 + $0x19a] sm:$0xff] }
 0x1c4   : > { %5844 = vmatprep.mubr.msk.f32.mxu1 %vm676_vm1, %v6891_v20 }
 0x1c6   : > { %5698 = vmatmul.mubr.msk.f32.gmra.mrb[40].mxu0 %vm676_vm1, %v6897_v22 }
 0x1c7   : > { %5845 = vmatmul.mubr.msk.f32.gmra.mrb[24].mxu1 %vm676_vm1, %v6897_v22  ;;  %5700 = vmatprep.mubr.msk.f32.mxu0 %vm676_vm1, %v6903_v28 }
 0x1c8   : > { %5847 = vmatprep.mubr.msk.f32.mxu1 %vm676_vm1, %v6903_v28  ;;  %v3828_v28 = vld [vmem:[#allocation2 + $0x1a2] sm:$0xff] }
 0x1ca   : > { %5701 = vmatmul.mubr.msk.f32.gmra.mrb[42].mxu0 %vm676_vm1, %v6909_v30 }
 0x1cb   : > { %5848 = vmatmul.mubr.msk.f32.gmra.mrb[26].mxu1 %vm676_vm1, %v6909_v30  ;;  %5703 = vmatprep.mubr.msk.f32.mxu0 %vm676_vm1, %v6915_v36 }
 0x1cc   : > { %5850 = vmatprep.mubr.msk.f32.mxu1 %vm676_vm1, %v6915_v36 }
 0x1ce   : > { %5704 = vmatmul.mubr.msk.f32.gmra.mrb[44].mxu0 %vm676_vm1, %v6921_v38 }
 0x1cf   : > { %5851 = vmatmul.mubr.msk.f32.gmra.mrb[28].mxu1 %vm676_vm1, %v6921_v38 }
 0x1d0   : > { %5853 = vmatprep.mubr.msk.f32.mxu1 %vm676_vm1, %v6667_v1  ;;  %v3053_v1 = vld [vmem:[#allocation2 + $0x198] sm:$0xff] }
 0x1d3   : > { %5854 = vmatmul.mubr.msk.f32.gmra.mrb[30].mxu1 %vm676_vm1, %v6669_v2  ;;  %v3054_v2 = vld [vmem:[#allocation2 + $0x1a0] sm:$0xff] }
 0x1d4   : > { %5856 = vmatprep.mubr.msk.f32.mxu1 %vm676_vm1, %v6693_v16  ;;  %v3410_v16 = vld [vmem:[#allocation2 + $0x31] sm:$0xff] }
 0x1d7   : > { %5857 = vmatmul.mubr.msk.f32.gmra.mrb[0].mxu1 %vm676_vm1, %v6695_v17  ;;  %v3411_v17 = vld [vmem:[#allocation2 + $0x39] sm:$0xff] }
 0x1d8   : > { %5859 = vmatprep.mubr.msk.f32.mxu1 %vm676_vm1, %v6714_v27  ;;  %v3412_v27 = vld [vmem:[#allocation2 + $0x49] sm:$0xff] }
 0x1db   : > { %5860 = vmatmul.mubr.msk.f32.gmra.mrb[2].mxu1 %vm676_vm1, %v6716_v29  ;;  %v3413_v29 = vld [vmem:[#allocation2 + $0x51] sm:$0xff] }
 0x1dc   : > { %5862 = vmatprep.mubr.msk.f32.mxu1 %vm676_vm1, %v6734_v41  ;;  %v3414_v41 = vld [vmem:[#allocation2 + $0x61] sm:$0xff] }
 0x1df   : > { %5863 = vmatmul.mubr.msk.f32.gmra.mrb[4].mxu1 %vm676_vm1, %v6736_v44  ;;  %v3415_v44 = vld [vmem:[#allocation2 + $0x69] sm:$0xff] }
 0x1e0   : > { %5865 = vmatprep.mubr.msk.f32.mxu1 %vm676_vm1, %v6754_v58  ;;  %v3416_v58 = vld [vmem:[#allocation2 + $0x79] sm:$0xff] }
 0x1e3   : > { %5866 = vmatmul.mubr.msk.f32.gmra.mrb[6].mxu1 %vm676_vm1, %v6756_v60  ;;  %v3417_v60 = vld [vmem:[#allocation2 + $0x81] sm:$0xff] }
 0x1e4   : > { %5868 = vmatprep.mubr.msk.f32.mxu1 %vm676_vm1, %v6774_v13  ;;  %v3418_v13 = vld [vmem:[#allocation2 + $0x91] sm:$0xff] }
 0x1e7   : > { %5869 = vmatmul.mubr.msk.f32.gmra.mrb[8].mxu1 %vm676_vm1, %v6776_v18  ;;  %v3419_v18 = vld [vmem:[#allocation2 + $0x99] sm:$0xff] }
 0x1e8   : > { %5871 = vmatprep.mubr.msk.f32.mxu1 %vm676_vm1, %v6793_v45  ;;  %v3420_v45 = vld [vmem:[#allocation2 + $0xa9] sm:$0xff] }
 0x1eb   : > { %5872 = vmatmul.mubr.msk.f32.gmra.mrb[10].mxu1 %vm676_vm1, %v6795_v31  ;;  %v3421_v31 = vld [vmem:[#allocation2 + $0xb1] sm:$0xff] }
 0x1ec   : > { %5874 = vmatprep.mubr.msk.f32.mxu1 %vm676_vm1, %v6810_v37  ;;  %v7718_v37 = vld [vmem:[#allocation15_spill] sm:$0xff] }
 0x1ef   : > { %5875 = vmatmul.mubr.msk.f32.gmra.mrb[12].mxu1 %vm676_vm1, %v6812_v39  ;;  %v7719_v39 = vld [vmem:[#allocation16_spill] sm:$0xff] }
 0x1f0   : > { %5877 = vmatprep.mubr.msk.f32.mxu1 %vm676_vm1, %v6825_v51 }
 0x1f3   : > { %5878 = vmatmul.mubr.msk.f32.gmra.mrb[14].mxu1 %vm676_vm1, %v6827_v52  ;;  %v7720_v52 = vld [vmem:[#allocation17_spill] sm:$0xff] }
 0x1f4   : > { %5880 = vmatprep.mubr.msk.f32.mxu1 %vm676_vm1, %v3053_v1 }
 0x1f7   : > { %5881 = vmatmul.mubr.msk.f32.gmra.mrb[16].mxu1 %vm676_vm1, %v3054_v2 }
 0x1f8   : > { %5885 = vmatprep.mubr.msk.f32.mxu1 %vm676_vm1, %v3410_v16 }
 0x1fb   : > { %5886 = vmatmul.mubr.msk.f32.vlgmr.msra.gmra.mrb[18].mxu1 %vm676_vm1, %v3411_v17 }
 0x1fc   : > { %5934 = vmatpush3.msra.mxu1 %v5040_v53  ;;  %5888 = vmatprep.mubr.msk.f32.mxu1 %vm676_vm1, %v3412_v27 }
 0x1ff   : > { %5889 = vmatmul.mubr.msk.f32.gmra.mrb[20].mxu1 %vm676_vm1, %v3413_v29  ;;  %v7437_v29 = vld [vmem:[%s7668_s4] ss:$0 sm:$0xff] }
 0x200   : > { %5891 = vmatprep.mubr.msk.f32.mxu1 %vm676_vm1, %v3414_v41 }
 0x203   : > { %5892 = vmatmul.mubr.msk.f32.gmra.mrb[22].mxu1 %vm676_vm1, %v3415_v44 }
 0x204   : > { %5894 = vmatprep.mubr.msk.f32.mxu1 %vm676_vm1, %v3416_v58 }
 0x207   : > { %5895 = vmatmul.mubr.msk.f32.gmra.mrb[24].mxu1 %vm676_vm1, %v3417_v60 }
 0x208   : > { %5897 = vmatprep.mubr.msk.f32.mxu1 %vm676_vm1, %v3418_v13 }
 0x20b   : > { %5898 = vmatmul.mubr.msk.f32.gmra.mrb[26].mxu1 %vm676_vm1, %v3419_v18 }
 0x20c   : > { %5900 = vmatprep.mubr.msk.f32.mxu1 %vm676_vm1, %v3420_v45 }
 0x20f   : > { %5901 = vmatmul.mubr.msk.f32.gmra.mrb[28].mxu1 %vm676_vm1, %v3421_v31 }
 0x210   : > { %5903 = vmatprep.mubr.msk.f32.mxu1 %vm676_vm1, %v6665_v0  ;;  %v4255_v0 = vld [vmem:[%s7669_s5] sm:$0xff] }
 0x211   : > { %5983 = vmatprep.subr.mxu0 %v4255_v0 }
 0x212   : > { %5984 = vmatpush3.msra.mxu0 %v4255_v0 }
 0x213   : > { %5904 = vmatmul.mubr.msk.f32.gmra.mrb[30].mxu1 %vm676_vm1, %v6677_v5  ;;  %v3440_v5 = vld [vmem:[#allocation2 + $0x199] sm:$0xff] }
 0x214   : > { %5906 = vmatprep.mubr.msk.f32.mxu1 %vm676_vm1, %v6691_v15  ;;  %v3441_v15 = vld [vmem:[#allocation2 + $0x1a1] sm:$0xff] }
 0x217   : > { %5907 = vmatmul.mubr.msk.f32.gmra.mrb[0].mxu1 %vm676_vm1, %v6704_v43  ;;  %v7706_v43 = vld [vmem:[#allocation3_spill] sm:$0xff] }
 0x218   : > { %5909 = vmatprep.mubr.msk.f32.mxu1 %vm676_vm1, %v6712_v26  ;;  %v7707_v26 = vld [vmem:[#allocation4_spill] sm:$0xff] }
 0x21b   : > { %5910 = vmatmul.mubr.msk.f32.gmra.mrb[2].mxu1 %vm676_vm1, %v6724_v32  ;;  %v7708_v32 = vld [vmem:[#allocation5_spill] sm:$0xff] }
 0x21c   : > { %5912 = vmatprep.mubr.msk.f32.mxu1 %vm676_vm1, %v6732_v40  ;;  %v7709_v40 = vld [vmem:[#allocation6_spill] sm:$0xff] }
 0x21f   : > { %5913 = vmatmul.mubr.msk.f32.gmra.mrb[4].mxu1 %vm676_vm1, %v6744_v48  ;;  %v7710_v48 = vld [vmem:[#allocation7_spill] sm:$0xff] }
 0x220   : > { %5915 = vmatprep.mubr.msk.f32.mxu1 %vm676_vm1, %v6752_v56  ;;  %v7711_v56 = vld [vmem:[#allocation8_spill] sm:$0xff] }
 0x223   : > { %5916 = vmatmul.mubr.msk.f32.gmra.mrb[6].mxu1 %vm676_vm1, %v6764_v62  ;;  %v7712_v62 = vld [vmem:[#allocation9_spill] sm:$0xff] }
 0x224   : > { %5918 = vmatprep.mubr.msk.f32.mxu1 %vm676_vm1, %v6772_v11  ;;  %v7713_v11 = vld [vmem:[#allocation10_spill] sm:$0xff] }
 0x227   : > { %5919 = vmatmul.mubr.msk.f32.gmra.mrb[8].mxu1 %vm676_vm1, %v6784_v21  ;;  %v7714_v21 = vld [vmem:[#allocation11_spill] sm:$0xff] }
 0x228   : > { %5921 = vmatprep.mubr.msk.f32.mxu1 %vm676_vm1, %v6791_v25  ;;  %v7715_v25 = vld [vmem:[#allocation12_spill] sm:$0xff] }
 0x22b   : > { %5922 = vmatmul.mubr.msk.f32.gmra.mrb[10].mxu1 %vm676_vm1, %v6802_v33  ;;  %v7716_v33 = vld [vmem:[#allocation13_spill] sm:$0xff] }
 0x22c   : > { %5924 = vmatprep.mubr.msk.f32.mxu1 %vm676_vm1, %v6808_v35  ;;  %v7717_v35 = vld [vmem:[#allocation14_spill] sm:$0xff] }
 0x22f   : > { %5925 = vmatmul.mubr.msk.f32.gmra.mrb[12].mxu1 %vm676_vm1, %v6818_v46 }
 0x230   : > { %5927 = vmatprep.mubr.msk.f32.mxu1 %vm676_vm1, %v6991_v49 }
 0x233   : > { %5928 = vmatmul.mubr.msk.f32.gmra.mrb[14].mxu1 %vm676_vm1, %v6996_v57 }
 0x234   : > { %5930 = vmatprep.mubr.msk.f32.mxu1 %vm676_vm1, %v3440_v5 }
 0x237   : > { %5931 = vmatmul.mubr.msk.f32.gmra.mrb[16].mxu1 %vm676_vm1, %v3441_v15 }
 0x238   : > { %5935 = vmatprep.mubr.msk.f32.mxu1 %vm676_vm1, %v7011_v9 }
 0x23b   : > { %5936 = vmatmul.mubr.msk.f32.vlgmr.msra.gmra.mrb[18].mxu1 %vm676_vm1, %v7019_v42 }
 0x23c   : > { %5938 = vmatprep.mubr.msk.f32.mxu1 %vm676_vm1, %v7025_v10 }
 0x23f   : > { %5939 = vmatmul.mubr.msk.f32.gmra.mrb[20].mxu1 %vm676_vm1, %v7031_v19 }
 0x240   : > { %5941 = vmatprep.mubr.msk.f32.mxu1 %vm676_vm1, %v7037_v23 }
 0x243   : > { %5942 = vmatmul.mubr.msk.f32.gmra.mrb[22].mxu1 %vm676_vm1, %v7043_v24 }
 0x244   : > { %5944 = vmatprep.mubr.msk.f32.mxu1 %vm676_vm1, %v7049_v34 }
 0x247   : > { %5945 = vmatmul.mubr.msk.f32.gmra.mrb[24].mxu1 %vm676_vm1, %v7055_v50 }
 0x248   : > { %5947 = vmatprep.mubr.msk.f32.mxu1 %vm676_vm1, %v7061_v61 }
 0x24b   : > { %5948 = vmatmul.mubr.msk.f32.gmra.mrb[26].mxu1 %vm676_vm1, %v7706_v43 }
 0x24c   : > { %5950 = vmatprep.mubr.msk.f32.mxu1 %vm676_vm1, %v7707_v26 }
 0x24f   : > { %5951 = vmatmul.mubr.msk.f32.gmra.mrb[28].mxu1 %vm676_vm1, %v7708_v32 }
 0x250   : > { %5953 = vmatprep.mubr.msk.f32.mxu1 %vm676_vm1, %v7709_v40 }
 0x253   : > { %5954 = vmatmul.mubr.msk.f32.gmra.mrb[30].mxu1 %vm676_vm1, %v7710_v48 }
 0x254   : > { %5956 = vmatprep.mubr.msk.f32.mxu1 %vm676_vm1, %v7711_v56 }
 0x257   : > { %5957 = vmatmul.mubr.msk.f32.gmra.mrb[0].mxu1 %vm676_vm1, %v7712_v62 }
 0x258   : > { %5959 = vmatprep.mubr.msk.f32.mxu1 %vm676_vm1, %v7713_v11 }
 0x25b   : > { %5960 = vmatmul.mubr.msk.f32.gmra.mrb[2].mxu1 %vm676_vm1, %v7714_v21 }
 0x25c   : > { %5962 = vmatprep.mubr.msk.f32.mxu1 %vm676_vm1, %v7715_v25 }
 0x25f   : > { %5963 = vmatmul.mubr.msk.f32.gmra.mrb[4].mxu1 %vm676_vm1, %v7716_v33 }
 0x260   : > { %5965 = vmatprep.mubr.msk.f32.mxu1 %vm676_vm1, %v7717_v35 }
 0x263   : > { %5966 = vmatmul.mubr.msk.f32.gmra.mrb[6].mxu1 %vm676_vm1, %v7718_v37 }
 0x264   : > { %5968 = vmatprep.mubr.msk.f32.mxu1 %vm676_vm1, %v7719_v39 }
 0x265   : > { %v7382_v46 = vpop.f32.mrb[46].mxu0 }
 0x266   : > { %v7384_v51 = vpop.f32.mrb[47].mxu0 }
 0x267   : > { %5969 = vmatmul.mubr.msk.f32.gmra.mrb[8].mxu1 %vm676_vm1, %v7720_v52 }
 0x268   : > { %5971 = vmatprep.mubr.msk.f32.mxu1 %vm676_vm1, %v7721_v54 }
 0x269   : > { %v7390_v63 = vpop.f32.mrb[48].mxu0 }
 0x26a   : > { %v7392_v59 = vpop.f32.mrb[49].mxu0 }
 0x26b   : > { %5972 = vmatmul.mubr.msk.f32.gmra.mrb[10].mxu1 %vm676_vm1, %v7722_v4 }
 0x26c   : > { %5974 = vmatprep.mubr.msk.f32.mxu1 %vm676_vm1, %v7169_v55 }
 0x26d   : > { %v7398_v6 = vpop.f32.mrb[50].mxu0 }
 0x26e   : > { %v7400_v12 = vpop.f32.mrb[51].mxu0 }
 0x26f   : > { %5975 = vmatmul.mubr.msk.f32.gmra.mrb[12].mxu1 %vm676_vm1, %v7175_v7 }
 0x270   : > { %5977 = vmatprep.mubr.msk.f32.mxu1 %vm676_vm1, %v7181_v3 }
 0x271   : > { %v7406_v20 = vpop.f32.mrb[52].mxu0 }
 0x272   : > { %v7408_v22 = vpop.f32.mrb[53].mxu0 }
 0x273   : > { %5978 = vmatmul.mubr.msk.f32.gmra.mrb[14].mxu1 %vm676_vm1, %v7187_v47 }
 0x274   : > { %5980 = vmatprep.mubr.msk.f32.mxu1 %vm676_vm1, %v3827_v14 }
 0x275   : > { %v7413_v30 = vpop.f32.mrb[54].mxu0 }
 0x276   : > { %v7415_v36 = vpop.f32.mrb[55].mxu0 }
 0x277   : > { %5981 = vmatmul.mubr.msk.f32.gmra.mrb[16].mxu1 %vm676_vm1, %v3828_v28 }
 0x279   : > { %v7418_v38 = vpop.f32.mrb[56].mxu0 }
 0x27a   : > { %v7420_v49 = vpop.f32.mrb[57].mxu0 }
 0x27d   : > { %v7422_v57 = vpop.f32.mrb[58].mxu0 }
 0x27e   : > { %v7424_v8 = vpop.f32.mrb[59].mxu0 }
 0x281   : > { %v7426_v9 = vpop.f32.mrb[60].mxu0 }
 0x282   : > { %v7428_v42 = vpop.f32.mrb[61].mxu0 }
 0x285   : > { %v7430_v10 = vpop.f32.mrb[62].mxu0 }
 0x286   : > { %v7432_v19 = vpop.f32.mrb[63].mxu0 }
 0x289   : > { %v5687_v23 = vpop.f32.mrb[32].mxu0 }
 0x28a   : > { %v2057_v24 = vpop.f32.mrb[33].mxu0 }
 0x28d   : > { %v5690_v34 = vpop.f32.mrb[34].mxu0 }
 0x28e   : > { %v2067_v50 = vpop.f32.mrb[35].mxu0 }
 0x291   : > { %v5693_v61 = vpop.f32.mrb[36].mxu0 }
 0x292   : > { %v2077_v47 = vpop.f32.mrb[37].mxu0 }
 0x295   : > { %v5696_v55 = vpop.f32.mrb[38].mxu0 }
 0x296   : > { %v2087_v7 = vpop.f32.mrb[39].mxu0 }
 0x299   : > { %v5699_v3 = vpop.f32.mrb[40].mxu0 }
 0x29a   : > { %v2097_v53 = vpop.f32.mrb[41].mxu0 }
 0x29d   : > { %v5702_v1 = vpop.f32.mrb[42].mxu0 }
 0x29e   : > { %v2107_v2 = vpop.f32.mrb[43].mxu0 }
 0x2a1   : > { %v5705_v16 = vpop.f32.mrb[44].mxu0 }
 0x2a2   : > { %v2117_v17 = vpop.f32.mrb[45].mxu0 }
 0x30e   : > { %v5937_v27 = vpop.f32.mrb[18].mxu1 }
 0x30f   : > { %v6043_v41 = vadd.f32 %v5937_v27, %v5687_v23  ;;  %v3993_v44 = vpop.f32.mrb[19].mxu1 }
 0x310   : > { %v6044_v58 = vadd.f32 %v3993_v44, %v2057_v24 }
 0x311   : > { %v4192_v60 = vadd.f32 %v6043_v41, %v7437_v29 }
 0x312   : > { %v4191_v13 = vadd.f32 %v6044_v58, %v7437_v29  ;;  %v5940_v18 = vpop.f32.mrb[20].mxu1 }
 0x313   : > { %v6045_v45 = vadd.f32 %v5940_v18, %v5690_v34  ;;  %v4003_v31 = vpop.f32.mrb[21].mxu1  ;;  %v4224_v15 = vmax.f32 %v4192_v60, 0.0 }
 0x314   : > { %v4223_v0 = vmax.f32 %v4191_v13, 0.0  ;;  %v6046_v5 = vadd.f32 %v4003_v31, %v2067_v50 }
 0x315   : > { %v4194_v43 = vadd.f32 %v6045_v45, %v7437_v29 }
 0x316   : > { %v4193_v26 = vadd.f32 %v6046_v5, %v7437_v29  ;;  %v5943_v32 = vpop.f32.mrb[22].mxu1  ;;  %5985 = vmatprep.mubr.msk.f32.mxu0 %vm676_vm1, %v4223_v0 }
 0x317   : > { %v6047_v40 = vadd.f32 %v5943_v32, %v5693_v61  ;;  %v4013_v48 = vpop.f32.mrb[23].mxu1  ;;  %5986 = vmatmul.mubr.msk.f32.vlgmr.msra.gmra.mrb[64].mxu0 %vm676_vm1, %v4224_v15  ;;  %v4226_v11 = vmax.f32 %v4194_v43, 0.0 }
 0x318   : > { %v4225_v56 = vmax.f32 %v4193_v26, 0.0  ;;  %v6048_v62 = vadd.f32 %v4013_v48, %v2077_v47 }
 0x319   : > { %v4196_v21 = vadd.f32 %v6047_v40, %v7437_v29 }
 0x31a   : > { %v4195_v25 = vadd.f32 %v6048_v62, %v7437_v29  ;;  %v5946_v33 = vpop.f32.mrb[24].mxu1  ;;  %5988 = vmatprep.mubr.msk.f32.mxu0 %vm676_vm1, %v4225_v56 }
 0x31b   : > { %v6049_v35 = vadd.f32 %v5946_v33, %v5696_v55  ;;  %v4023_v37 = vpop.f32.mrb[25].mxu1  ;;  %5989 = vmatmul.mubr.msk.f32.gmra.mrb[66].mxu0 %vm676_vm1, %v4226_v11  ;;  %v4228_v54 = vmax.f32 %v4196_v21, 0.0 }
 0x31c   : > { %v4227_v39 = vmax.f32 %v4195_v25, 0.0  ;;  %v6050_v52 = vadd.f32 %v4023_v37, %v2087_v7 }
 0x31d   : > { %v4198_v4 = vadd.f32 %v6049_v35, %v7437_v29 }
 0x31e   : > { %v4197_v14 = vadd.f32 %v6050_v52, %v7437_v29  ;;  %v5949_v28 = vpop.f32.mrb[26].mxu1  ;;  %5991 = vmatprep.mubr.msk.f32.mxu0 %vm676_vm1, %v4227_v39 }
 0x31f   : > { %v6051_v23 = vadd.f32 %v5949_v28, %v5699_v3  ;;  %v4033_v24 = vpop.f32.mrb[27].mxu1  ;;  %5992 = vmatmul.mubr.msk.f32.gmra.mrb[68].mxu0 %vm676_vm1, %v4228_v54  ;;  %v4230_v61 = vmax.f32 %v4198_v4, 0.0 }
 0x320   : > { %v4229_v34 = vmax.f32 %v4197_v14, 0.0  ;;  %v6052_v50 = vadd.f32 %v4033_v24, %v2097_v53 }
 0x321   : > { %v4200_v47 = vadd.f32 %v6051_v23, %v7437_v29 }
 0x322   : > { %v4199_v55 = vadd.f32 %v6052_v50, %v7437_v29  ;;  %v5952_v7 = vpop.f32.mrb[28].mxu1  ;;  %5994 = vmatprep.mubr.msk.f32.mxu0 %vm676_vm1, %v4229_v34 }
 0x323   : > { %v6053_v27 = vadd.f32 %v5952_v7, %v5702_v1  ;;  %v4043_v41 = vpop.f32.mrb[29].mxu1  ;;  %5995 = vmatmul.mubr.msk.f32.gmra.mrb[70].mxu0 %vm676_vm1, %v4230_v61  ;;  %v4232_v3 = vmax.f32 %v4200_v47, 0.0 }
 0x324   : > { %v4231_v44 = vmax.f32 %v4199_v55, 0.0  ;;  %v6054_v58 = vadd.f32 %v4043_v41, %v2107_v2 }
 0x325   : > { %v4202_v60 = vadd.f32 %v6053_v27, %v7437_v29 }
 0x326   : > { %v4201_v13 = vadd.f32 %v6054_v58, %v7437_v29  ;;  %v5955_v53 = vpop.f32.mrb[30].mxu1  ;;  %5997 = vmatprep.mubr.msk.f32.mxu0 %vm676_vm1, %v4231_v44 }
 0x327   : > { %v6055_v18 = vadd.f32 %v5955_v53, %v5705_v16  ;;  %v4053_v45 = vpop.f32.mrb[31].mxu1  ;;  %5998 = vmatmul.mubr.msk.f32.gmra.mrb[72].mxu0 %vm676_vm1, %v4232_v3  ;;  %v4234_v1 = vmax.f32 %v4202_v60, 0.0 }
 0x328   : > { %v4233_v31 = vmax.f32 %v4201_v13, 0.0  ;;  %v6056_v0 = vadd.f32 %v4053_v45, %v2117_v17 }
 0x329   : > { %v4204_v5 = vadd.f32 %v6055_v18, %v7437_v29 }
 0x32a   : > { %v4203_v15 = vadd.f32 %v6056_v0, %v7437_v29  ;;  %v5958_v2 = vpop.f32.mrb[0].mxu1  ;;  %6000 = vmatprep.mubr.msk.f32.mxu0 %vm676_vm1, %v4233_v31 }
 0x32b   : > { %v6057_v43 = vadd.f32 %v5958_v2, %v7382_v46  ;;  %v4063_v26 = vpop.f32.mrb[1].mxu1  ;;  %6001 = vmatmul.mubr.msk.f32.gmra.mrb[74].mxu0 %vm676_vm1, %v4234_v1  ;;  %v4236_v40 = vmax.f32 %v4204_v5, 0.0 }
 0x32c   : > { %v4235_v32 = vmax.f32 %v4203_v15, 0.0  ;;  %v6058_v16 = vadd.f32 %v4063_v26, %v7384_v51 }
 0x32d   : > { %v4206_v48 = vadd.f32 %v6057_v43, %v7437_v29 }
 0x32e   : > { %v4205_v17 = vadd.f32 %v6058_v16, %v7437_v29  ;;  %v5961_v56 = vpop.f32.mrb[2].mxu1  ;;  %6003 = vmatprep.mubr.msk.f32.mxu0 %vm676_vm1, %v4235_v32 }
 0x32f   : > { %v6059_v62 = vadd.f32 %v5961_v56, %v7390_v63  ;;  %v4073_v11 = vpop.f32.mrb[3].mxu1  ;;  %6004 = vmatmul.mubr.msk.f32.gmra.mrb[76].mxu0 %vm676_vm1, %v4236_v40  ;;  %v4238_v25 = vmax.f32 %v4206_v48, 0.0 }
 0x330   : > { %v4237_v46 = vmax.f32 %v4205_v17, 0.0  ;;  %v6060_v21 = vadd.f32 %v4073_v11, %v7392_v59 }
 0x331   : > { %v4208_v33 = vadd.f32 %v6059_v62, %v7437_v29 }
 0x332   : > { %v4207_v51 = vadd.f32 %v6060_v21, %v7437_v29  ;;  %v5964_v35 = vpop.f32.mrb[4].mxu1  ;;  %6006 = vmatprep.mubr.msk.f32.mxu0 %vm676_vm1, %v4237_v46 }
 0x333   : > { %v6061_v37 = vadd.f32 %v5964_v35, %v7398_v6  ;;  %v4083_v39 = vpop.f32.mrb[5].mxu1  ;;  %6007 = vmatmul.mubr.msk.f32.gmra.mrb[78].mxu0 %vm676_vm1, %v4238_v25  ;;  %v4240_v54 = vmax.f32 %v4208_v33, 0.0 }
 0x334   : > { %v4239_v63 = vmax.f32 %v4207_v51, 0.0  ;;  %v6062_v52 = vadd.f32 %v4083_v39, %v7400_v12  ;;  %v6308_v51 = vld [vmem:[%s6417_s14 + $0x8] sm:$0xff] }
 0x335   : > { %v4210_v4 = vadd.f32 %v6061_v37, %v7437_v29  ;;  %v6309_v37 = vld [vmem:[%s6417_s14] sm:$0xff] }
 0x336   : > { %v4209_v59 = vadd.f32 %v6062_v52, %v7437_v29  ;;  %v5967_v14 = vpop.f32.mrb[6].mxu1  ;;  %6009 = vmatprep.mubr.msk.f32.mxu0 %vm676_vm1, %v4239_v63 }
 0x337   : > { %v6063_v28 = vadd.f32 %v5967_v14, %v7406_v20  ;;  %v4093_v23 = vpop.f32.mrb[7].mxu1  ;;  %6010 = vmatmul.mubr.msk.f32.gmra.mrb[80].mxu0 %vm676_vm1, %v4240_v54  ;;  %v4242_v34 = vmax.f32 %v4210_v4, 0.0 }
 0x338   : > { %v4241_v6 = vmax.f32 %v4209_v59, 0.0  ;;  %v6064_v24 = vadd.f32 %v4093_v23, %v7408_v22 }
 0x339   : > { %v4212_v50 = vadd.f32 %v6063_v28, %v7437_v29  ;;  %v6310_v28 = vld [vmem:[%s6417_s14 + $0x18] sm:$0xff] }
 0x33a   : > { %v4211_v12 = vadd.f32 %v6064_v24, %v7437_v29  ;;  %v5970_v61 = vpop.f32.mrb[8].mxu1  ;;  %6012 = vmatprep.mubr.msk.f32.mxu0 %vm676_vm1, %v4241_v6  ;;  %v6311_v6 = vld [vmem:[%s6417_s14 + $0x10] sm:$0xff] }
 0x33b   : > { %v6065_v47 = vadd.f32 %v5970_v61, %v7413_v30  ;;  %v4103_v55 = vpop.f32.mrb[9].mxu1  ;;  %6013 = vmatmul.mubr.msk.f32.gmra.mrb[82].mxu0 %vm676_vm1, %v4242_v34  ;;  %v4244_v27 = vmax.f32 %v4212_v50, 0.0 }
 0x33c   : > { %v4243_v20 = vmax.f32 %v4211_v12, 0.0  ;;  %v6066_v7 = vadd.f32 %v4103_v55, %v7415_v36 }
 0x33d   : > { %v4214_v41 = vadd.f32 %v6065_v47, %v7437_v29 }
 0x33e   : > { %v4213_v22 = vadd.f32 %v6066_v7, %v7437_v29  ;;  %v5973_v44 = vpop.f32.mrb[10].mxu1  ;;  %6015 = vmatprep.mubr.msk.f32.mxu0 %vm676_vm1, %v4243_v20  ;;  %v6312_v20 = vld [vmem:[%s6417_s14 + $0x28] sm:$0xff] }
 0x33f   : > { %v6067_v58 = vadd.f32 %v5973_v44, %v7418_v38  ;;  %v4113_v3 = vpop.f32.mrb[11].mxu1  ;;  %6016 = vmatmul.mubr.msk.f32.gmra.mrb[84].mxu0 %vm676_vm1, %v4244_v27  ;;  %v4246_v13 = vmax.f32 %v4214_v41, 0.0  ;;  %v6313_v27 = vld [vmem:[%s6417_s14 + $0x20] sm:$0xff] }
 0x340   : > { %v4245_v30 = vmax.f32 %v4213_v22, 0.0  ;;  %v6068_v60 = vadd.f32 %v4113_v3, %v7420_v49 }
 0x341   : > { %v4216_v53 = vadd.f32 %v6067_v58, %v7437_v29 }
 0x342   : > { %v4215_v36 = vadd.f32 %v6068_v60, %v7437_v29  ;;  %v5976_v18 = vpop.f32.mrb[12].mxu1  ;;  %6018 = vmatprep.mubr.msk.f32.mxu0 %vm676_vm1, %v4245_v30 }
 0x343   : > { %v6069_v45 = vadd.f32 %v5976_v18, %v7422_v57  ;;  %v4123_v31 = vpop.f32.mrb[13].mxu1  ;;  %6019 = vmatmul.mubr.msk.f32.gmra.mrb[86].mxu0 %vm676_vm1, %v4246_v13  ;;  %v4248_v1 = vmax.f32 %v4216_v53, 0.0  ;;  %v6314_v13 = vld [vmem:[%s6417_s14 + $0x38] sm:$0xff] }
 0x344   : > { %v4247_v38 = vmax.f32 %v4215_v36, 0.0  ;;  %v6070_v0 = vadd.f32 %v4123_v31, %v7424_v8  ;;  %v6315_v36 = vld [vmem:[%s6417_s14 + $0x30] sm:$0xff] }
 0x345   : > { %v4218_v5 = vadd.f32 %v6069_v45, %v7437_v29 }
 0x346   : > { %v4217_v49 = vadd.f32 %v6070_v0, %v7437_v29  ;;  %v5979_v15 = vpop.f32.mrb[14].mxu1  ;;  %6021 = vmatprep.mubr.msk.f32.mxu0 %vm676_vm1, %v4247_v38 }
 0x347   : > { %v6071_v2 = vadd.f32 %v5979_v15, %v7426_v9  ;;  %v4133_v43 = vpop.f32.mrb[15].mxu1  ;;  %6022 = vmatmul.mubr.msk.f32.gmra.mrb[88].mxu0 %vm676_vm1, %v4248_v1  ;;  %v4250_v32 = vmax.f32 %v4218_v5, 0.0 }
 0x348   : > { %v4249_v57 = vmax.f32 %v4217_v49, 0.0  ;;  %v6072_v26 = vadd.f32 %v4133_v43, %v7428_v42  ;;  %v6316_v49 = vld [vmem:[%s6417_s14 + $0x48] sm:$0xff] }
 0x349   : > { %v4220_v16 = vadd.f32 %v6071_v2, %v7437_v29  ;;  %v6317_v2 = vld [vmem:[%s6417_s14 + $0x40] sm:$0xff] }
 0x34a   : > { %v4219_v8 = vadd.f32 %v6072_v26, %v7437_v29  ;;  %v5982_v40 = vpop.f32.mrb[16].mxu1  ;;  %6024 = vmatprep.mubr.msk.f32.mxu0 %vm676_vm1, %v4249_v57 }
 0x34b   : > { %v6073_v48 = vadd.f32 %v5982_v40, %v7430_v10  ;;  %v4143_v17 = vpop.f32.mrb[17].mxu1  ;;  %6025 = vmatmul.mubr.msk.f32.gmra.mrb[90].mxu0 %vm676_vm1, %v4250_v32  ;;  %v4252_v62 = vmax.f32 %v4220_v16, 0.0 }
 0x34c   : > { %v4251_v9 = vmax.f32 %v4219_v8, 0.0  ;;  %v6074_v56 = vadd.f32 %v4143_v17, %v7432_v19  ;;  %v7524_v19 = vld [vmem:[%s7670_s6] ss:$0 sm:$0xff] }
 0x34d   : > { %v4222_v42 = vadd.f32 %v6073_v48, %v7437_v29  ;;  %v6318_v48 = vld [vmem:[%s6417_s14 + $0x58] sm:$0xff] }
 0x34e   : > { %v4221_v11 = vadd.f32 %v6074_v56, %v7437_v29  ;;  %6027 = vmatprep.mubr.msk.f32.mxu0 %vm676_vm1, %v4251_v9  ;;  %v6319_v9 = vld [vmem:[%s6417_s14 + $0x50] sm:$0xff] }
 0x34f   : > { %6028 = vmatmul.mubr.msk.f32.gmra.mrb[92].mxu0 %vm676_vm1, %v4252_v62  ;;  %v4254_v10 = vmax.f32 %v4222_v42, 0.0 }
 0x350   : > { %v4253_v46 = vmax.f32 %v4221_v11, 0.0 }
 0x352   : > { %6030 = vmatprep.mubr.msk.f32.mxu0 %vm676_vm1, %v4253_v46 }
 0x353   : > { %6031 = vmatmul.mubr.msk.f32.gmra.mrb[94].mxu0 %vm676_vm1, %v4254_v10 }
 0x3ea   : > { %v5987_v21 = vpop.f32.mrb[64].mxu0 }
 0x3eb   : > { %v4431_v25 = vadd.f32 %v5987_v21, %v7524_v19  ;;  %v4425_v29 = vpop.f32.mrb[65].mxu0 }
 0x3ec   : > { %v4426_v33 = vadd.f32 %v7524_v19, %v4425_v29 }
 0x3ed   : > { %v4585_v35 = vadd.f32 %v6308_v51, %v4431_v25  ;;  %v6320_v25 = vld [vmem:[%s6417_s14 + $0x68] sm:$0xff] }
 0x3ee   : > { %v4584_v39 = vadd.f32 %v6309_v37, %v4426_v33  ;;  %v5990_v63 = vpop.f32.mrb[66].mxu0  ;;  %v6321_v33 = vld [vmem:[%s6417_s14 + $0x60] sm:$0xff] }
 0x3ef   : > { %v4617_v52 = vmax.f32 %v4585_v35, 0.0  ;;  %v4441_v54 = vadd.f32 %v5990_v63, %v7524_v19  ;;  %v4435_v4 = vpop.f32.mrb[67].mxu0 }
 0x3f0   : > { %v4616_v59 = vmax.f32 %v4584_v39, 0.0  ;;  %v4436_v14 = vadd.f32 %v7524_v19, %v4435_v4  ;;  %v6322_v4 = vld [vmem:[%s6417_s14 + $0x78] sm:$0xff] }
 0x3f1   : > { %4649 = vst.msk [vmem:[%s7534_s26 + $0x8] sm:$0xff] %vm322_vm0, %v4617_v52  ;;  %v4587_v23 = vadd.f32 %v6310_v28, %v4441_v54 }
 0x3f2   : > { %4648 = vst.msk [vmem:[%s7534_s26] sm:$0xff] %vm322_vm0, %v4616_v59  ;;  %v4586_v24 = vadd.f32 %v6311_v6, %v4436_v14  ;;  %v5993_v34 = vpop.f32.mrb[68].mxu0  ;;  %v6323_v14 = vld [vmem:[%s6417_s14 + $0x70] sm:$0xff] }
 0x3f3   : > { %v4619_v50 = vmax.f32 %v4587_v23, 0.0  ;;  %v4451_v12 = vadd.f32 %v5993_v34, %v7524_v19  ;;  %v4445_v61 = vpop.f32.mrb[69].mxu0 }
 0x3f4   : > { %v4618_v47 = vmax.f32 %v4586_v24, 0.0  ;;  %v4446_v55 = vadd.f32 %v7524_v19, %v4445_v61  ;;  %v6324_v61 = vld [vmem:[%s6417_s14 + $0x88] sm:$0xff] }
 0x3f5   : > { %4651 = vst.msk [vmem:[%s7534_s26 + $0x18] sm:$0xff] %vm322_vm0, %v4619_v50  ;;  %v4589_v7 = vadd.f32 %v6312_v20, %v4451_v12 }
 0x3f6   : > { %4650 = vst.msk [vmem:[%s7534_s26 + $0x10] sm:$0xff] %vm322_vm0, %v4618_v47  ;;  %v4588_v41 = vadd.f32 %v6313_v27, %v4446_v55  ;;  %v5996_v22 = vpop.f32.mrb[70].mxu0  ;;  %v6325_v55 = vld [vmem:[%s6417_s14 + $0x80] sm:$0xff] }
 0x3f7   : > { %v4621_v44 = vmax.f32 %v4589_v7, 0.0  ;;  %v4461_v58 = vadd.f32 %v5996_v22, %v7524_v19  ;;  %v4455_v3 = vpop.f32.mrb[71].mxu0 }
 0x3f8   : > { %v4620_v30 = vmax.f32 %v4588_v41, 0.0  ;;  %v4456_v60 = vadd.f32 %v7524_v19, %v4455_v3  ;;  %v6326_v3 = vld [vmem:[%s6417_s14 + $0x98] sm:$0xff] }
 0x3f9   : > { %4653 = vst.msk [vmem:[%s7534_s26 + $0x28] sm:$0xff] %vm322_vm0, %v4621_v44  ;;  %v4591_v53 = vadd.f32 %v6314_v13, %v4461_v58 }
 0x3fa   : > { %4652 = vst.msk [vmem:[%s7534_s26 + $0x20] sm:$0xff] %vm322_vm0, %v4620_v30  ;;  %v4590_v18 = vadd.f32 %v6315_v36, %v4456_v60  ;;  %v5999_v45 = vpop.f32.mrb[72].mxu0  ;;  %v6327_v60 = vld [vmem:[%s6417_s14 + $0x90] sm:$0xff] }
 0x3fb   : > { %v4623_v31 = vmax.f32 %v4591_v53, 0.0  ;;  %v4471_v38 = vadd.f32 %v5999_v45, %v7524_v19  ;;  %v4465_v0 = vpop.f32.mrb[73].mxu0 }
 0x3fc   : > { %v4622_v1 = vmax.f32 %v4590_v18, 0.0  ;;  %v4466_v5 = vadd.f32 %v7524_v19, %v4465_v0  ;;  %v6328_v0 = vld [vmem:[%s6417_s14 + $0xa8] sm:$0xff] }
 0x3fd   : > { %4655 = vst.msk [vmem:[%s7534_s26 + $0x38] sm:$0xff] %vm322_vm0, %v4623_v31  ;;  %v4593_v15 = vadd.f32 %v6316_v49, %v4471_v38 }
 0x3fe   : > { %4654 = vst.msk [vmem:[%s7534_s26 + $0x30] sm:$0xff] %vm322_vm0, %v4622_v1  ;;  %v4592_v43 = vadd.f32 %v6317_v2, %v4466_v5  ;;  %v6002_v57 = vpop.f32.mrb[74].mxu0  ;;  %v6329_v5 = vld [vmem:[%s6417_s14 + $0xa0] sm:$0xff] }
 0x3ff   : > { %v4625_v26 = vmax.f32 %v4593_v15, 0.0  ;;  %v4481_v32 = vadd.f32 %v6002_v57, %v7524_v19  ;;  %v4475_v16 = vpop.f32.mrb[75].mxu0 }
 0x400   : > { %v4624_v8 = vmax.f32 %v4592_v43, 0.0  ;;  %v4476_v40 = vadd.f32 %v7524_v19, %v4475_v16  ;;  %v6330_v16 = vld [vmem:[%s6417_s14 + $0xb8] sm:$0xff] }
 0x401   : > { %4657 = vst.msk [vmem:[%s7534_s26 + $0x48] sm:$0xff] %vm322_vm0, %v4625_v26  ;;  %v4595_v17 = vadd.f32 %v6318_v48, %v4481_v32 }
 0x402   : > { %4656 = vst.msk [vmem:[%s7534_s26 + $0x40] sm:$0xff] %vm322_vm0, %v4624_v8  ;;  %v4594_v56 = vadd.f32 %v6319_v9, %v4476_v40  ;;  %v6005_v62 = vpop.f32.mrb[76].mxu0  ;;  %v6331_v40 = vld [vmem:[%s6417_s14 + $0xb0] sm:$0xff] }
 0x403   : > { %v4627_v42 = vmax.f32 %v4595_v17, 0.0  ;;  %v4491_v11 = vadd.f32 %v6005_v62, %v7524_v19  ;;  %v4485_v46 = vpop.f32.mrb[77].mxu0 }
 0x404   : > { %v4626_v10 = vmax.f32 %v4594_v56, 0.0  ;;  %v4486_v21 = vadd.f32 %v7524_v19, %v4485_v46  ;;  %v6332_v46 = vld [vmem:[%s6417_s14 + $0xc8] sm:$0xff] }
 0x405   : > { %4659 = vst.msk [vmem:[%s7534_s26 + $0x58] sm:$0xff] %vm322_vm0, %v4627_v42  ;;  %v4597_v29 = vadd.f32 %v6320_v25, %v4491_v11 }
 0x406   : > { %4658 = vst.msk [vmem:[%s7534_s26 + $0x50] sm:$0xff] %vm322_vm0, %v4626_v10  ;;  %v4596_v51 = vadd.f32 %v6321_v33, %v4486_v21  ;;  %v6008_v35 = vpop.f32.mrb[78].mxu0  ;;  %v6333_v21 = vld [vmem:[%s6417_s14 + $0xc0] sm:$0xff] }
 0x407   : > { %v4629_v37 = vmax.f32 %v4597_v29, 0.0  ;;  %v4501_v39 = vadd.f32 %v6008_v35, %v7524_v19  ;;  %v4495_v63 = vpop.f32.mrb[79].mxu0 }
 0x408   : > { %v4628_v52 = vmax.f32 %v4596_v51, 0.0  ;;  %v4496_v54 = vadd.f32 %v7524_v19, %v4495_v63  ;;  %v6334_v63 = vld [vmem:[%s6417_s14 + $0xd8] sm:$0xff] }
 0x409   : > { %4661 = vst.msk [vmem:[%s7534_s26 + $0x68] sm:$0xff] %vm322_vm0, %v4629_v37  ;;  %v4599_v59 = vadd.f32 %v6322_v4, %v4501_v39 }
 0x40a   : > { %4660 = vst.msk [vmem:[%s7534_s26 + $0x60] sm:$0xff] %vm322_vm0, %v4628_v52  ;;  %v4598_v28 = vadd.f32 %v6323_v14, %v4496_v54  ;;  %v6011_v23 = vpop.f32.mrb[80].mxu0  ;;  %v6335_v54 = vld [vmem:[%s6417_s14 + $0xd0] sm:$0xff] }
 0x40b   : > { %v4631_v6 = vmax.f32 %v4599_v59, 0.0  ;;  %v4511_v24 = vadd.f32 %v6011_v23, %v7524_v19  ;;  %v4505_v34 = vpop.f32.mrb[81].mxu0 }
 0x40c   : > { %v4630_v50 = vmax.f32 %v4598_v28, 0.0  ;;  %v4506_v12 = vadd.f32 %v7524_v19, %v4505_v34  ;;  %v6336_v34 = vld [vmem:[%s6417_s14 + $0xe8] sm:$0xff] }
 0x40d   : > { %4663 = vst.msk [vmem:[%s7534_s26 + $0x78] sm:$0xff] %vm322_vm0, %v4631_v6  ;;  %v4601_v47 = vadd.f32 %v6324_v61, %v4511_v24 }
 0x40e   : > { %4662 = vst.msk [vmem:[%s7534_s26 + $0x70] sm:$0xff] %vm322_vm0, %v4630_v50  ;;  %v4600_v20 = vadd.f32 %v6325_v55, %v4506_v12  ;;  %v6014_v7 = vpop.f32.mrb[82].mxu0  ;;  %v6337_v12 = vld [vmem:[%s6417_s14 + $0xe0] sm:$0xff] }
 0x40f   : > { %v4633_v27 = vmax.f32 %v4601_v47, 0.0  ;;  %v4521_v41 = vadd.f32 %v6014_v7, %v7524_v19  ;;  %v4515_v22 = vpop.f32.mrb[83].mxu0 }
 0x410   : > { %v4632_v44 = vmax.f32 %v4600_v20, 0.0  ;;  %v4516_v58 = vadd.f32 %v7524_v19, %v4515_v22  ;;  %v6338_v22 = vld [vmem:[%s6417_s14 + $0xf8] sm:$0xff] }
 0x411   : > { %4665 = vst.msk [vmem:[%s7534_s26 + $0x88] sm:$0xff] %vm322_vm0, %v4633_v27  ;;  %v4603_v30 = vadd.f32 %v6326_v3, %v4521_v41 }
 0x412   : > { %4664 = vst.msk [vmem:[%s7534_s26 + $0x80] sm:$0xff] %vm322_vm0, %v4632_v44  ;;  %v4602_v13 = vadd.f32 %v6327_v60, %v4516_v58  ;;  %v6017_v53 = vpop.f32.mrb[84].mxu0  ;;  %v6339_v58 = vld [vmem:[%s6417_s14 + $0xf0] sm:$0xff] }
 0x413   : > { %v4635_v36 = vmax.f32 %v4603_v30, 0.0  ;;  %v4531_v18 = vadd.f32 %v6017_v53, %v7524_v19  ;;  %v4525_v45 = vpop.f32.mrb[85].mxu0 }
 0x414   : > { %v4634_v31 = vmax.f32 %v4602_v13, 0.0  ;;  %v4526_v38 = vadd.f32 %v7524_v19, %v4525_v45 }
 0x415   : > { %4667 = vst.msk [vmem:[%s7534_s26 + $0x98] sm:$0xff] %vm322_vm0, %v4635_v36  ;;  %v4605_v1 = vadd.f32 %v6328_v0, %v4531_v18 }
 0x416   : > { %4666 = vst.msk [vmem:[%s7534_s26 + $0x90] sm:$0xff] %vm322_vm0, %v4634_v31  ;;  %v4604_v49 = vadd.f32 %v6329_v5, %v4526_v38  ;;  %v6020_v15 = vpop.f32.mrb[86].mxu0 }
 0x417   : > { %v4637_v2 = vmax.f32 %v4605_v1, 0.0  ;;  %v4541_v43 = vadd.f32 %v6020_v15, %v7524_v19  ;;  %v4535_v57 = vpop.f32.mrb[87].mxu0 }
 0x418   : > { %v4636_v26 = vmax.f32 %v4604_v49, 0.0  ;;  %v4536_v32 = vadd.f32 %v7524_v19, %v4535_v57 }
 0x419   : > { %4669 = vst.msk [vmem:[%s7534_s26 + $0xa8] sm:$0xff] %vm322_vm0, %v4637_v2  ;;  %v4607_v8 = vadd.f32 %v6330_v16, %v4541_v43 }
 0x41a   : > { %4668 = vst.msk [vmem:[%s7534_s26 + $0xa0] sm:$0xff] %vm322_vm0, %v4636_v26  ;;  %v4606_v48 = vadd.f32 %v6331_v40, %v4536_v32  ;;  %v6023_v17 = vpop.f32.mrb[88].mxu0 }
 0x41b   : > { %v4639_v9 = vmax.f32 %v4607_v8, 0.0  ;;  %v4551_v56 = vadd.f32 %v6023_v17, %v7524_v19  ;;  %v4545_v62 = vpop.f32.mrb[89].mxu0 }
 0x41c   : > { %v4638_v42 = vmax.f32 %v4606_v48, 0.0  ;;  %v4546_v11 = vadd.f32 %v7524_v19, %v4545_v62 }
 0x41d   : > { %4671 = vst.msk [vmem:[%s7534_s26 + $0xb8] sm:$0xff] %vm322_vm0, %v4639_v9  ;;  %v4609_v10 = vadd.f32 %v6332_v46, %v4551_v56 }
 0x41e   : > { %4670 = vst.msk [vmem:[%s7534_s26 + $0xb0] sm:$0xff] %vm322_vm0, %v4638_v42  ;;  %v4608_v25 = vadd.f32 %v6333_v21, %v4546_v11  ;;  %v6026_v29 = vpop.f32.mrb[90].mxu0 }
 0x41f   : > { %v4641_v33 = vmax.f32 %v4609_v10, 0.0  ;;  %v4561_v51 = vadd.f32 %v6026_v29, %v7524_v19  ;;  %v4555_v35 = vpop.f32.mrb[91].mxu0 }
 0x420   : > { %v4640_v37 = vmax.f32 %v4608_v25, 0.0  ;;  %v4556_v39 = vadd.f32 %v7524_v19, %v4555_v35 }
 0x421   : > { %4673 = vst.msk [vmem:[%s7534_s26 + $0xc8] sm:$0xff] %vm322_vm0, %v4641_v33  ;;  %v4611_v52 = vadd.f32 %v6334_v63, %v4561_v51 }
 0x422   : > { %4672 = vst.msk [vmem:[%s7534_s26 + $0xc0] sm:$0xff] %vm322_vm0, %v4640_v37  ;;  %v4610_v4 = vadd.f32 %v6335_v54, %v4556_v39  ;;  %v6029_v59 = vpop.f32.mrb[92].mxu0 }
 0x423   : > { %v4643_v14 = vmax.f32 %v4611_v52, 0.0  ;;  %v4571_v28 = vadd.f32 %v6029_v59, %v7524_v19  ;;  %v4565_v23 = vpop.f32.mrb[93].mxu0 }
 0x424   : > { %v4642_v6 = vmax.f32 %v4610_v4, 0.0  ;;  %v4566_v24 = vadd.f32 %v7524_v19, %v4565_v23 }
 0x425   : > { %4675 = vst.msk [vmem:[%s7534_s26 + $0xd8] sm:$0xff] %vm322_vm0, %v4643_v14  ;;  %v4613_v50 = vadd.f32 %v6336_v34, %v4571_v28 }
 0x426   : > { %4674 = vst.msk [vmem:[%s7534_s26 + $0xd0] sm:$0xff] %vm322_vm0, %v4642_v6  ;;  %v4612_v61 = vadd.f32 %v6337_v12, %v4566_v24  ;;  %v6032_v47 = vpop.f32.mrb[94].mxu0 }
 0x427   : > { %v4645_v55 = vmax.f32 %v4613_v50, 0.0  ;;  %v4581_v20 = vadd.f32 %v6032_v47, %v7524_v19  ;;  %v4575_v7 = vpop.f32.mrb[95].mxu0 }
 0x428   : > { %v4644_v27 = vmax.f32 %v4612_v61, 0.0  ;;  %v4576_v41 = vadd.f32 %v7524_v19, %v4575_v7 }
 0x429   : > { %4677 = vst.msk [vmem:[%s7534_s26 + $0xe8] sm:$0xff] %vm322_vm0, %v4645_v55  ;;  %v4615_v44 = vadd.f32 %v6338_v22, %v4581_v20 }
 0x42a   : > { %4676 = vst.msk [vmem:[%s7534_s26 + $0xe0] sm:$0xff] %vm322_vm0, %v4644_v27  ;;  %v4614_v3 = vadd.f32 %v6339_v58, %v4576_v41 }
 0x42b   : > { %v4647_v30 = vmax.f32 %v4615_v44, 0.0 }
 0x42c   : > { %v4646_v60 = vmax.f32 %v4614_v3, 0.0 }
 0x42d   : > { %4679 = vst.msk [vmem:[%s7534_s26 + $0xf8] sm:$0xff] %vm322_vm0, %v4647_v30 }
 0x42e   : > { %4678 = vst.msk [vmem:[%s7534_s26 + $0xf0] sm:$0xff] %vm322_vm0, %v4646_v60 }
 0x42f PF: > { %s17_s24 = sadd.s32 1, %s6346_s24  }
 0x430   : > { %p14_p4 = scmp.ge.s32.totalorder %s17_s24, 4  }
 0x432   :  { %16 = sbr.rel (!%p14_p4) target bundleno = 1 (0x1), region = 88 }

</bundles_post_ra>
